<compile_context>
chip_gen: v7x
topology: tpu7x:2x2x1
jax: 0.10.0
libtpu: 0.0.40
codegen_flags: <defaults>
</compile_context>

<pallas_src>
import jax
import jax.numpy as jnp
from jax.experimental import pallas as pl
from jax.experimental.pallas import tpu as pltpu


def _round_up(x, m):
    return ((x + m - 1) // m) * m


def _odernn_kernel(gih_ref, dt_ref, mk_ref,
                   whh_ref, wode_ref, bode_ref,
                   w1_ref, b1_ref, w2_ref, b2_ref,
                   out_ref):
    n_tp, tb, _ = gih_ref.shape
    L = whh_ref.shape[0]

    # loop-invariant weights -> values once (live across the whole recurrence)
    whh = whh_ref[...]                                  # (L, 4L) packed gates
    wode = wode_ref[...]                                # (L, L)
    bode = jnp.broadcast_to(bode_ref[...], (tb, L))     # hoisted broadcast

    def step(s, carry):
        h, c = carry                 # (tb, L) each
        dt = dt_ref[s]               # (tb, L) pre-broadcast delta-t
        mk = mk_ref[s]               # (tb, L) pre-broadcast observation mask

        # ---- z0_diffeq_solver step --------------------------------------
        # TODO(synk): external z0_diffeq_solver has no in-script definition;
        # modeled as one explicit-Euler step of a linear+tanh ODE function.
        dh = jnp.tanh(jnp.dot(h, wode, preferred_element_type=jnp.float32) + bode)
        h = h + dt * dh

        # ---- LSTMCell: input projection hoisted to wrapper; one MXU push ----
        gates = gih_ref[s] + jnp.dot(h, whh, preferred_element_type=jnp.float32)
        i_g = jax.nn.sigmoid(gates[:, 0 * L:1 * L])
        f_g = jax.nn.sigmoid(gates[:, 1 * L:2 * L])
        g_g = jnp.tanh(gates[:, 2 * L:3 * L])
        o_g = jax.nn.sigmoid(gates[:, 3 * L:4 * L])
        c_new = f_g * c + i_g * g_g
        h_new = o_g * jnp.tanh(c_new)

        # ---- masked state update (delta form: one select-less update) ------
        h = h + mk * (h_new - h)
        c = c + mk * (c_new - c)
        return (h, c)

    h0 = jnp.zeros((tb, L), jnp.float32)
    c0 = jnp.zeros((tb, L), jnp.float32)
    unroll = True if n_tp <= 16 else 8
    h, _ = jax.lax.fori_loop(0, n_tp, step, (h0, c0), unroll=unroll)

    # ---- transform_z0: Linear -> Tanh -> Linear (mean|std merged output) ---
    hid = jnp.tanh(jnp.dot(h, w1_ref[...], preferred_element_type=jnp.float32)
                   + b1_ref[...])
    out_ref[...] = (jnp.dot(hid, w2_ref[...], preferred_element_type=jnp.float32)
                    + b2_ref[...])


def encoder_z0_ode_rnn(data, time_steps, params, *, run_backwards=True):
    """data: (B, n_tp, D) f32, time_steps: (B, n_tp) f32 -> (mean_z0, std_z0)."""
    assert run_backwards, "only the module's default run_backwards=True is implemented"
    f32 = jnp.float32
    B, n_tp, D = data.shape
    L = params["wode_t"].shape[0]
    H = params["w1_t"].shape[1]
    z0_dim = params["w2_t"].shape[1] // 2

    SUB, LANE = 8, 128
    Bp = _round_up(B, SUB)                  # sublane-dense batch
    Hp = _round_up(H, LANE)                 # lane-dense transform hidden
    Op = _round_up(2 * z0_dim, LANE)        # lane-dense merged mean|std output
    TILE_B = SUB                            # per-grid-step batch tile

    # ---- per-step side inputs in step order (step 0 == last time index) ----
    data_rev = jnp.transpose(data, (1, 0, 2))[::-1].astype(f32)        # (n_tp,B,D)
    dt0 = (time_steps[:, -1] - (time_steps[:, -1] + 0.01))[:, None]    # == -0.01
    dt_fwd = time_steps[:, :-1] - time_steps[:, 1:]                    # ts[i]-ts[i+1]
    dt_rev = jnp.concatenate([dt0, dt_fwd[:, ::-1]], axis=1)           # (B, n_tp)
    dt_rev = jnp.transpose(dt_rev)[:, :, None].astype(f32)             # (n_tp,B,1)
    nd = D // 2
    mask = (jnp.sum(data[:, :, nd:], axis=-1, keepdims=True) > 0).astype(f32)
    mask_rev = jnp.transpose(mask, (1, 0, 2))[::-1]                    # (n_tp,B,1)

    # Hoisted LSTM input projection: ONE batched matmul for all steps with
    # both LSTM biases folded in (removes xi@Wih + 2 bias adds from every
    # iteration of the serial recurrence).
    gih = (jnp.einsum("tbd,dg->tbg", data_rev, params["wih_t"])
           + params["bih"] + params["bhh"])                            # (n_tp,B,4L)

    # pre-broadcast dt / mask to latent width (no in-kernel lane broadcasts)
    dt_rev = jnp.broadcast_to(dt_rev, (n_tp, B, L))
    mask_rev = jnp.broadcast_to(mask_rev, (n_tp, B, L))

    pad_b = lambda x: jnp.pad(x, ((0, 0), (0, Bp - B), (0, 0)))
    gih, dt_rev, mask_rev = pad_b(gih), pad_b(dt_rev), pad_b(mask_rev)

    def pad2(x, r, c):
        return jnp.pad(x, ((0, r - x.shape[0]), (0, c - x.shape[1])))

    # Weights stay at their natural gate-packed sizes (4*L lanes in one block);
    # only the transform head is padded to lane-dense widths (zero pads can't
    # corrupt the result since the matching activations are exactly 0).
    whh_p = params["whh_t"].astype(f32)                 # (L, 4L)
    wode_p = params["wode_t"].astype(f32)               # (L, L)
    bode_p = params["bode"].astype(f32)                 # (1, L)
    w1_p = pad2(params["w1_t"], L, Hp).astype(f32)      # (L, Hp)
    b1_p = pad2(params["b1"], 1, Hp).astype(f32)        # (1, Hp)
    w2_p = pad2(params["w2_t"], Hp, Op).astype(f32)     # (Hp, Op)
    b2_p = pad2(params["b2"], 1, Op).astype(f32)        # (1, Op)

    # Batch grid axis (parallel): shards batch tiles across TensorCores on v7x
    # once Bp/TILE_B > 1; weights broadcast via index_map returning block 0.
    grid = (Bp // TILE_B,)
    bspec3 = lambda a: pl.BlockSpec((a.shape[0], TILE_B, a.shape[2]),
                                    lambda b: (0, b, 0))
    wspec = lambda a: pl.BlockSpec(a.shape, lambda b: (0, 0))

    out = pl.pallas_call(
        _odernn_kernel,
        out_shape=jax.ShapeDtypeStruct((Bp, Op), f32),
        grid=grid,
        in_specs=[bspec3(gih), bspec3(dt_rev), bspec3(mask_rev),
                  wspec(whh_p), wspec(wode_p), wspec(bode_p),
                  wspec(w1_p), wspec(b1_p), wspec(w2_p), wspec(b2_p)],
        out_specs=pl.BlockSpec((TILE_B, Op), lambda b: (b, 0)),
        compiler_params=pltpu.CompilerParams(
            dimension_semantics=("parallel",)),
    )(gih, dt_rev, mask_rev, whh_p, wode_p, bode_p, w1_p, b1_p, w2_p, b2_p)

    mean = out[:B, :z0_dim]
    std = jax.nn.softplus(out[:B, z0_dim:2 * z0_dim])
    return mean, std


# ------------------------- pure-JAX reference --------------------------------
def reference(data, ts, params):
    B, n_tp, D = data.shape
    L = params["whh_t"].shape[0]
    h = jnp.zeros((B, L), jnp.float32)
    c = jnp.zeros((B, L), jnp.float32)
    prev_t, t_i = ts[:, -1] + 0.01, ts[:, -1]
    for i in range(n_tp - 1, -1, -1):
        dt = (t_i - prev_t)[:, None]
        h = h + dt * jnp.tanh(h @ params["wode_t"] + params["bode"])
        xi = data[:, i, :]
        gates = xi @ params["wih_t"] + params["bih"] + h @ params["whh_t"] + params["bhh"]
        ig = jax.nn.sigmoid(gates[:, :L])
        fg = jax.nn.sigmoid(gates[:, L:2 * L])
        gg = jnp.tanh(gates[:, 2 * L:3 * L])
        og = jax.nn.sigmoid(gates[:, 3 * L:])
        c_n = fg * c + ig * gg
        h_n = og * jnp.tanh(c_n)
        mask = (jnp.sum(xi[:, D // 2:], axis=1, keepdims=True) > 0).astype(jnp.float32)
        h = mask * h_n + (1.0 - mask) * h
        c = mask * c_n + (1.0 - mask) * c
        prev_t, t_i = ts[:, i], ts[:, i - 1]
    hid = jnp.tanh(h @ params["w1_t"] + params["b1"])
    out = hid @ params["w2_t"] + params["b2"]
    z0 = out.shape[1] // 2
    return out[:, :z0], jax.nn.softplus(out[:, z0:])


# ------------------------- deterministic params ------------------------------
def make_params(key, latent_dim, input_dim, z0_dim):
    ks = jax.random.split(key, 6)
    n = lambda k, shp: (0.1 * jax.random.normal(k, shp)).astype(jnp.float32)
    return dict(
        # LSTMCell: weight_ih (4L, D), weight_hh (4L, L) — stored pre-transposed.
        wih_t=n(ks[0], (input_dim, 4 * latent_dim)),
        bih=jnp.zeros((1, 4 * latent_dim), jnp.float32),
        whh_t=n(ks[1], (latent_dim, 4 * latent_dim)),
        bhh=jnp.zeros((1, 4 * latent_dim), jnp.float32),
        # synthetic linear ODE func for z0_diffeq_solver
        wode_t=n(ks[2], (latent_dim, latent_dim)),
        bode=jnp.zeros((1, latent_dim), jnp.float32),
        # transform_z0: Linear(L,100) -> Tanh -> Linear(100, 2*z0)
        w1_t=n(ks[3], (latent_dim, 100)),
        b1=jnp.zeros((1, 100), jnp.float32),
        w2_t=n(ks[4], (100, 2 * z0_dim)),
        b2=jnp.zeros((1, 2 * z0_dim), jnp.float32),
    )


if __name__ == "__main__":
    B, n_tp, input_dim, latent_dim = 4, 8, 16, 32
    z0_dim = latent_dim  # module default (z0_dim=None)

    key = jax.random.PRNGKey(0)
    kp, kd, km, kt = jax.random.split(key, 4)
    params = make_params(kp, latent_dim, input_dim, z0_dim)

    # data = [values | mask] along the feature axis (get_mask reads the 2nd half)
    nd = input_dim // 2
    values = jax.random.normal(kd, (B, n_tp, nd), jnp.float32)
    mask_bits = (jax.random.uniform(km, (B, n_tp, nd)) > 0.3).astype(jnp.float32)
    data = jnp.concatenate([values * mask_bits, mask_bits], axis=-1)

    time_steps = jnp.broadcast_to(
        jnp.linspace(0.0, 1.0, n_tp, dtype=jnp.float32)[None, :], (B, n_tp)
    ) + 0.05 * jax.random.uniform(kt, (B, n_tp), jnp.float32)

    enc = jax.jit(lambda d, t: encoder_z0_ode_rnn(d, t, params))
    mean_z0, std_z0 = enc(data, time_steps)
    jax.block_until_ready((mean_z0, std_z0))

    mean_ref, std_ref = reference(data, time_steps, params)
    assert mean_z0.shape == (B, z0_dim) and std_z0.shape == (B, z0_dim)
    assert jnp.allclose(mean_z0, mean_ref, atol=2e-3, rtol=2e-3)
    assert jnp.allclose(std_z0, std_ref, atol=2e-3, rtol=2e-3)
    assert bool(jnp.all(std_z0 > 0))

    print("KERNEL_OK")
</pallas_src>

<mosaic_0001>
module attributes {stable_mosaic.version = 11 : i64} {
  func.func @_odernn_kernel(%arg0: i32, %arg1: memref<8x8x128xf32, #tpu.memory_space<vmem>>, %arg2: memref<8x8x32xf32, #tpu.memory_space<vmem>>, %arg3: memref<8x8x32xf32, #tpu.memory_space<vmem>>, %arg4: memref<32x128xf32, #tpu.memory_space<vmem>>, %arg5: memref<32x32xf32, #tpu.memory_space<vmem>>, %arg6: memref<1x32xf32, #tpu.memory_space<vmem>>, %arg7: memref<32x128xf32, #tpu.memory_space<vmem>>, %arg8: memref<1x128xf32, #tpu.memory_space<vmem>>, %arg9: memref<128x128xf32, #tpu.memory_space<vmem>>, %arg10: memref<1x128xf32, #tpu.memory_space<vmem>>, %arg11: memref<8x128xf32, #tpu.memory_space<vmem>>) attributes {dimension_semantics = [#tpu.dimension_semantics<parallel>], iteration_bounds = array<i64: 1>, scalar_prefetch = 0 : i64, scratch_operands = 0 : i64, tpu.core_type = #tpu.core_type<tc>, window_params = [{transform_indices = @transform_0, window_bounds = array<i64: 8, 8, 128>}, {transform_indices = @transform_1, window_bounds = array<i64: 8, 8, 32>}, {transform_indices = @transform_2, window_bounds = array<i64: 8, 8, 32>}, {pipeline_mode = #tpu.pipeline_mode<synchronous>, transform_indices = @transform_3, window_bounds = array<i64: 32, 128>}, {pipeline_mode = #tpu.pipeline_mode<synchronous>, transform_indices = @transform_4, window_bounds = array<i64: 32, 32>}, {pipeline_mode = #tpu.pipeline_mode<synchronous>, transform_indices = @transform_5, window_bounds = array<i64: 1, 32>}, {pipeline_mode = #tpu.pipeline_mode<synchronous>, transform_indices = @transform_6, window_bounds = array<i64: 32, 128>}, {pipeline_mode = #tpu.pipeline_mode<synchronous>, transform_indices = @transform_7, window_bounds = array<i64: 1, 128>}, {pipeline_mode = #tpu.pipeline_mode<synchronous>, transform_indices = @transform_8, window_bounds = array<i64: 128, 128>}, {pipeline_mode = #tpu.pipeline_mode<synchronous>, transform_indices = @transform_9, window_bounds = array<i64: 1, 128>}, {transform_indices = @transform_10, window_bounds = array<i64: 8, 128>}]} {
    %c0 = arith.constant 0 : index
    %c0_0 = arith.constant 0 : index
    %0 = vector.load %arg4[%c0, %c0_0] : memref<32x128xf32, #tpu.memory_space<vmem>>, vector<32x128xf32>
    %c0_1 = arith.constant 0 : index
    %c0_2 = arith.constant 0 : index
    %1 = vector.load %arg5[%c0_1, %c0_2] : memref<32x32xf32, #tpu.memory_space<vmem>>, vector<32x32xf32>
    %c0_3 = arith.constant 0 : index
    %c0_4 = arith.constant 0 : index
    %2 = vector.load %arg6[%c0_3, %c0_4] : memref<1x32xf32, #tpu.memory_space<vmem>>, vector<1x32xf32>
    %3 = vector.shape_cast %2 : vector<1x32xf32> to vector<1x32xf32>
    %4 = vector.broadcast %3 : vector<1x32xf32> to vector<8x32xf32>
    %cst = arith.constant 0.000000e+00 : f32
    %5 = vector.broadcast %cst : f32 to vector<8x32xf32>
    %cst_5 = arith.constant 0.000000e+00 : f32
    %6 = vector.broadcast %cst_5 : f32 to vector<8x32xf32>
    %c0_i32 = arith.constant 0 : i32
    %7 = arith.index_cast %c0_i32 : i32 to index
    %c0_6 = arith.constant 0 : index
    %c0_7 = arith.constant 0 : index
    %8 = vector.load %arg2[%7, %c0_6, %c0_7] : memref<8x8x32xf32, #tpu.memory_space<vmem>>, vector<1x8x32xf32>
    %9 = vector.shape_cast %8 : vector<1x8x32xf32> to vector<8x32xf32>
    %10 = arith.index_cast %c0_i32 : i32 to index
    %c0_8 = arith.constant 0 : index
    %c0_9 = arith.constant 0 : index
    %11 = vector.load %arg3[%10, %c0_8, %c0_9] : memref<8x8x32xf32, #tpu.memory_space<vmem>>, vector<1x8x32xf32>
    %12 = vector.shape_cast %11 : vector<1x8x32xf32> to vector<8x32xf32>
    %cst_10 = arith.constant dense<0.000000e+00> : vector<8x32xf32>
    %13 = tpu.matmul %5, %1, %cst_10 {dimension_numbers = #tpu.dot_dimension_numbers<[1], [0], [0], [1], [0, 0, 1, 1], [], []>} : vector<8x32xf32>, vector<32x32xf32>, vector<8x32xf32> -> vector<8x32xf32>
    %14 = arith.addf %13, %4 : vector<8x32xf32>
    %15 = math.tanh %14 : vector<8x32xf32>
    %16 = arith.mulf %9, %15 : vector<8x32xf32>
    %17 = arith.addf %5, %16 : vector<8x32xf32>
    %18 = arith.index_cast %c0_i32 : i32 to index
    %c0_11 = arith.constant 0 : index
    %c0_12 = arith.constant 0 : index
    %19 = vector.load %arg1[%18, %c0_11, %c0_12] : memref<8x8x128xf32, #tpu.memory_space<vmem>>, vector<1x8x128xf32>
    %20 = vector.shape_cast %19 : vector<1x8x128xf32> to vector<8x128xf32>
    %cst_13 = arith.constant dense<0.000000e+00> : vector<8x128xf32>
    %21 = tpu.matmul %17, %0, %cst_13 {dimension_numbers = #tpu.dot_dimension_numbers<[1], [0], [0], [1], [0, 0, 1, 1], [], []>} : vector<8x32xf32>, vector<32x128xf32>, vector<8x128xf32> -> vector<8x128xf32>
    %22 = arith.addf %20, %21 : vector<8x128xf32>
    %23 = vector.extract_strided_slice %22 {offsets = [0, 0], sizes = [8, 32], strides = [1, 1]} : vector<8x128xf32> to vector<8x32xf32>
    %24 = arith.negf %23 : vector<8x32xf32>
    %25 = math.exp %24 : vector<8x32xf32>
    %cst_14 = arith.constant 1.000000e+00 : f32
    %26 = vector.broadcast %cst_14 : f32 to vector<8x32xf32>
    %27 = arith.addf %26, %25 : vector<8x32xf32>
    %28 = arith.divf %26, %27 : vector<8x32xf32>
    %29 = vector.extract_strided_slice %22 {offsets = [0, 32], sizes = [8, 32], strides = [1, 1]} : vector<8x128xf32> to vector<8x32xf32>
    %30 = arith.negf %29 : vector<8x32xf32>
    %31 = math.exp %30 : vector<8x32xf32>
    %cst_15 = arith.constant 1.000000e+00 : f32
    %32 = vector.broadcast %cst_15 : f32 to vector<8x32xf32>
    %33 = arith.addf %32, %31 : vector<8x32xf32>
    %34 = arith.divf %32, %33 : vector<8x32xf32>
    %35 = vector.extract_strided_slice %22 {offsets = [0, 64], sizes = [8, 32], strides = [1, 1]} : vector<8x128xf32> to vector<8x32xf32>
    %36 = math.tanh %35 : vector<8x32xf32>
    %37 = vector.extract_strided_slice %22 {offsets = [0, 96], sizes = [8, 32], strides = [1, 1]} : vector<8x128xf32> to vector<8x32xf32>
    %38 = arith.negf %37 : vector<8x32xf32>
    %39 = math.exp %38 : vector<8x32xf32>
    %cst_16 = arith.constant 1.000000e+00 : f32
    %40 = vector.broadcast %cst_16 : f32 to vector<8x32xf32>
    %41 = arith.addf %40, %39 : vector<8x32xf32>
    %42 = arith.divf %40, %41 : vector<8x32xf32>
    %43 = arith.mulf %34, %6 : vector<8x32xf32>
    %44 = arith.mulf %28, %36 : vector<8x32xf32>
    %45 = arith.addf %43, %44 : vector<8x32xf32>
    %46 = math.tanh %45 : vector<8x32xf32>
    %47 = arith.mulf %42, %46 : vector<8x32xf32>
    %48 = arith.subf %47, %17 : vector<8x32xf32>
    %49 = arith.mulf %12, %48 : vector<8x32xf32>
    %50 = arith.addf %17, %49 : vector<8x32xf32>
    %51 = arith.subf %45, %6 : vector<8x32xf32>
    %52 = arith.mulf %12, %51 : vector<8x32xf32>
    %53 = arith.addf %6, %52 : vector<8x32xf32>
    %c1_i32 = arith.constant 1 : i32
    %54 = arith.index_cast %c1_i32 : i32 to index
    %c0_17 = arith.constant 0 : index
    %c0_18 = arith.constant 0 : index
    %55 = vector.load %arg2[%54, %c0_17, %c0_18] : memref<8x8x32xf32, #tpu.memory_space<vmem>>, vector<1x8x32xf32>
    %56 = vector.shape_cast %55 : vector<1x8x32xf32> to vector<8x32xf32>
    %57 = arith.index_cast %c1_i32 : i32 to index
    %c0_19 = arith.constant 0 : index
    %c0_20 = arith.constant 0 : index
    %58 = vector.load %arg3[%57, %c0_19, %c0_20] : memref<8x8x32xf32, #tpu.memory_space<vmem>>, vector<1x8x32xf32>
    %59 = vector.shape_cast %58 : vector<1x8x32xf32> to vector<8x32xf32>
    %cst_21 = arith.constant dense<0.000000e+00> : vector<8x32xf32>
    %60 = tpu.matmul %50, %1, %cst_21 {dimension_numbers = #tpu.dot_dimension_numbers<[1], [0], [0], [1], [0, 0, 1, 1], [], []>} : vector<8x32xf32>, vector<32x32xf32>, vector<8x32xf32> -> vector<8x32xf32>
    %61 = arith.addf %60, %4 : vector<8x32xf32>
    %62 = math.tanh %61 : vector<8x32xf32>
    %63 = arith.mulf %56, %62 : vector<8x32xf32>
    %64 = arith.addf %50, %63 : vector<8x32xf32>
    %65 = arith.index_cast %c1_i32 : i32 to index
    %c0_22 = arith.constant 0 : index
    %c0_23 = arith.constant 0 : index
    %66 = vector.load %arg1[%65, %c0_22, %c0_23] : memref<8x8x128xf32, #tpu.memory_space<vmem>>, vector<1x8x128xf32>
    %67 = vector.shape_cast %66 : vector<1x8x128xf32> to vector<8x128xf32>
    %cst_24 = arith.constant dense<0.000000e+00> : vector<8x128xf32>
    %68 = tpu.matmul %64, %0, %cst_24 {dimension_numbers = #tpu.dot_dimension_numbers<[1], [0], [0], [1], [0, 0, 1, 1], [], []>} : vector<8x32xf32>, vector<32x128xf32>, vector<8x128xf32> -> vector<8x128xf32>
    %69 = arith.addf %67, %68 : vector<8x128xf32>
    %70 = vector.extract_strided_slice %69 {offsets = [0, 0], sizes = [8, 32], strides = [1, 1]} : vector<8x128xf32> to vector<8x32xf32>
    %71 = arith.negf %70 : vector<8x32xf32>
    %72 = math.exp %71 : vector<8x32xf32>
    %cst_25 = arith.constant 1.000000e+00 : f32
    %73 = vector.broadcast %cst_25 : f32 to vector<8x32xf32>
    %74 = arith.addf %73, %72 : vector<8x32xf32>
    %75 = arith.divf %73, %74 : vector<8x32xf32>
    %76 = vector.extract_strided_slice %69 {offsets = [0, 32], sizes = [8, 32], strides = [1, 1]} : vector<8x128xf32> to vector<8x32xf32>
    %77 = arith.negf %76 : vector<8x32xf32>
    %78 = math.exp %77 : vector<8x32xf32>
    %cst_26 = arith.constant 1.000000e+00 : f32
    %79 = vector.broadcast %cst_26 : f32 to vector<8x32xf32>
    %80 = arith.addf %79, %78 : vector<8x32xf32>
    %81 = arith.divf %79, %80 : vector<8x32xf32>
    %82 = vector.extract_strided_slice %69 {offsets = [0, 64], sizes = [8, 32], strides = [1, 1]} : vector<8x128xf32> to vector<8x32xf32>
    %83 = math.tanh %82 : vector<8x32xf32>
    %84 = vector.extract_strided_slice %69 {offsets = [0, 96], sizes = [8, 32], strides = [1, 1]} : vector<8x128xf32> to vector<8x32xf32>
    %85 = arith.negf %84 : vector<8x32xf32>
    %86 = math.exp %85 : vector<8x32xf32>
    %cst_27 = arith.constant 1.000000e+00 : f32
    %87 = vector.broadcast %cst_27 : f32 to vector<8x32xf32>
    %88 = arith.addf %87, %86 : vector<8x32xf32>
    %89 = arith.divf %87, %88 : vector<8x32xf32>
    %90 = arith.mulf %81, %53 : vector<8x32xf32>
    %91 = arith.mulf %75, %83 : vector<8x32xf32>
    %92 = arith.addf %90, %91 : vector<8x32xf32>
    %93 = math.tanh %92 : vector<8x32xf32>
    %94 = arith.mulf %89, %93 : vector<8x32xf32>
    %95 = arith.subf %94, %64 : vector<8x32xf32>
    %96 = arith.mulf %59, %95 : vector<8x32xf32>
    %97 = arith.addf %64, %96 : vector<8x32xf32>
    %98 = arith.subf %92, %53 : vector<8x32xf32>
    %99 = arith.mulf %59, %98 : vector<8x32xf32>
    %100 = arith.addf %53, %99 : vector<8x32xf32>
    %c2_i32 = arith.constant 2 : i32
    %101 = arith.index_cast %c2_i32 : i32 to index
    %c0_28 = arith.constant 0 : index
    %c0_29 = arith.constant 0 : index
    %102 = vector.load %arg2[%101, %c0_28, %c0_29] : memref<8x8x32xf32, #tpu.memory_space<vmem>>, vector<1x8x32xf32>
    %103 = vector.shape_cast %102 : vector<1x8x32xf32> to vector<8x32xf32>
    %104 = arith.index_cast %c2_i32 : i32 to index
    %c0_30 = arith.constant 0 : index
    %c0_31 = arith.constant 0 : index
    %105 = vector.load %arg3[%104, %c0_30, %c0_31] : memref<8x8x32xf32, #tpu.memory_space<vmem>>, vector<1x8x32xf32>
    %106 = vector.shape_cast %105 : vector<1x8x32xf32> to vector<8x32xf32>
    %cst_32 = arith.constant dense<0.000000e+00> : vector<8x32xf32>
    %107 = tpu.matmul %97, %1, %cst_32 {dimension_numbers = #tpu.dot_dimension_numbers<[1], [0], [0], [1], [0, 0, 1, 1], [], []>} : vector<8x32xf32>, vector<32x32xf32>, vector<8x32xf32> -> vector<8x32xf32>
    %108 = arith.addf %107, %4 : vector<8x32xf32>
    %109 = math.tanh %108 : vector<8x32xf32>
    %110 = arith.mulf %103, %109 : vector<8x32xf32>
    %111 = arith.addf %97, %110 : vector<8x32xf32>
    %112 = arith.index_cast %c2_i32 : i32 to index
    %c0_33 = arith.constant 0 : index
    %c0_34 = arith.constant 0 : index
    %113 = vector.load %arg1[%112, %c0_33, %c0_34] : memref<8x8x128xf32, #tpu.memory_space<vmem>>, vector<1x8x128xf32>
    %114 = vector.shape_cast %113 : vector<1x8x128xf32> to vector<8x128xf32>
    %cst_35 = arith.constant dense<0.000000e+00> : vector<8x128xf32>
    %115 = tpu.matmul %111, %0, %cst_35 {dimension_numbers = #tpu.dot_dimension_numbers<[1], [0], [0], [1], [0, 0, 1, 1], [], []>} : vector<8x32xf32>, vector<32x128xf32>, vector<8x128xf32> -> vector<8x128xf32>
    %116 = arith.addf %114, %115 : vector<8x128xf32>
    %117 = vector.extract_strided_slice %116 {offsets = [0, 0], sizes = [8, 32], strides = [1, 1]} : vector<8x128xf32> to vector<8x32xf32>
    %118 = arith.negf %117 : vector<8x32xf32>
    %119 = math.exp %118 : vector<8x32xf32>
    %cst_36 = arith.constant 1.000000e+00 : f32
    %120 = vector.broadcast %cst_36 : f32 to vector<8x32xf32>
    %121 = arith.addf %120, %119 : vector<8x32xf32>
    %122 = arith.divf %120, %121 : vector<8x32xf32>
    %123 = vector.extract_strided_slice %116 {offsets = [0, 32], sizes = [8, 32], strides = [1, 1]} : vector<8x128xf32> to vector<8x32xf32>
    %124 = arith.negf %123 : vector<8x32xf32>
    %125 = math.exp %124 : vector<8x32xf32>
    %cst_37 = arith.constant 1.000000e+00 : f32
    %126 = vector.broadcast %cst_37 : f32 to vector<8x32xf32>
    %127 = arith.addf %126, %125 : vector<8x32xf32>
    %128 = arith.divf %126, %127 : vector<8x32xf32>
    %129 = vector.extract_strided_slice %116 {offsets = [0, 64], sizes = [8, 32], strides = [1, 1]} : vector<8x128xf32> to vector<8x32xf32>
    %130 = math.tanh %129 : vector<8x32xf32>
    %131 = vector.extract_strided_slice %116 {offsets = [0, 96], sizes = [8, 32], strides = [1, 1]} : vector<8x128xf32> to vector<8x32xf32>
    %132 = arith.negf %131 : vector<8x32xf32>
    %133 = math.exp %132 : vector<8x32xf32>
    %cst_38 = arith.constant 1.000000e+00 : f32
    %134 = vector.broadcast %cst_38 : f32 to vector<8x32xf32>
    %135 = arith.addf %134, %133 : vector<8x32xf32>
    %136 = arith.divf %134, %135 : vector<8x32xf32>
    %137 = arith.mulf %128, %100 : vector<8x32xf32>
    %138 = arith.mulf %122, %130 : vector<8x32xf32>
    %139 = arith.addf %137, %138 : vector<8x32xf32>
    %140 = math.tanh %139 : vector<8x32xf32>
    %141 = arith.mulf %136, %140 : vector<8x32xf32>
    %142 = arith.subf %141, %111 : vector<8x32xf32>
    %143 = arith.mulf %106, %142 : vector<8x32xf32>
    %144 = arith.addf %111, %143 : vector<8x32xf32>
    %145 = arith.subf %139, %100 : vector<8x32xf32>
    %146 = arith.mulf %106, %145 : vector<8x32xf32>
    %147 = arith.addf %100, %146 : vector<8x32xf32>
    %c3_i32 = arith.constant 3 : i32
    %148 = arith.index_cast %c3_i32 : i32 to index
    %c0_39 = arith.constant 0 : index
    %c0_40 = arith.constant 0 : index
    %149 = vector.load %arg2[%148, %c0_39, %c0_40] : memref<8x8x32xf32, #tpu.memory_space<vmem>>, vector<1x8x32xf32>
    %150 = vector.shape_cast %149 : vector<1x8x32xf32> to vector<8x32xf32>
    %151 = arith.index_cast %c3_i32 : i32 to index
    %c0_41 = arith.constant 0 : index
    %c0_42 = arith.constant 0 : index
    %152 = vector.load %arg3[%151, %c0_41, %c0_42] : memref<8x8x32xf32, #tpu.memory_space<vmem>>, vector<1x8x32xf32>
    %153 = vector.shape_cast %152 : vector<1x8x32xf32> to vector<8x32xf32>
    %cst_43 = arith.constant dense<0.000000e+00> : vector<8x32xf32>
    %154 = tpu.matmul %144, %1, %cst_43 {dimension_numbers = #tpu.dot_dimension_numbers<[1], [0], [0], [1], [0, 0, 1, 1], [], []>} : vector<8x32xf32>, vector<32x32xf32>, vector<8x32xf32> -> vector<8x32xf32>
    %155 = arith.addf %154, %4 : vector<8x32xf32>
    %156 = math.tanh %155 : vector<8x32xf32>
    %157 = arith.mulf %150, %156 : vector<8x32xf32>
    %158 = arith.addf %144, %157 : vector<8x32xf32>
    %159 = arith.index_cast %c3_i32 : i32 to index
    %c0_44 = arith.constant 0 : index
    %c0_45 = arith.constant 0 : index
    %160 = vector.load %arg1[%159, %c0_44, %c0_45] : memref<8x8x128xf32, #tpu.memory_space<vmem>>, vector<1x8x128xf32>
    %161 = vector.shape_cast %160 : vector<1x8x128xf32> to vector<8x128xf32>
    %cst_46 = arith.constant dense<0.000000e+00> : vector<8x128xf32>
    %162 = tpu.matmul %158, %0, %cst_46 {dimension_numbers = #tpu.dot_dimension_numbers<[1], [0], [0], [1], [0, 0, 1, 1], [], []>} : vector<8x32xf32>, vector<32x128xf32>, vector<8x128xf32> -> vector<8x128xf32>
    %163 = arith.addf %161, %162 : vector<8x128xf32>
    %164 = vector.extract_strided_slice %163 {offsets = [0, 0], sizes = [8, 32], strides = [1, 1]} : vector<8x128xf32> to vector<8x32xf32>
    %165 = arith.negf %164 : vector<8x32xf32>
    %166 = math.exp %165 : vector<8x32xf32>
    %cst_47 = arith.constant 1.000000e+00 : f32
    %167 = vector.broadcast %cst_47 : f32 to vector<8x32xf32>
    %168 = arith.addf %167, %166 : vector<8x32xf32>
    %169 = arith.divf %167, %168 : vector<8x32xf32>
    %170 = vector.extract_strided_slice %163 {offsets = [0, 32], sizes = [8, 32], strides = [1, 1]} : vector<8x128xf32> to vector<8x32xf32>
    %171 = arith.negf %170 : vector<8x32xf32>
    %172 = math.exp %171 : vector<8x32xf32>
    %cst_48 = arith.constant 1.000000e+00 : f32
    %173 = vector.broadcast %cst_48 : f32 to vector<8x32xf32>
    %174 = arith.addf %173, %172 : vector<8x32xf32>
    %175 = arith.divf %173, %174 : vector<8x32xf32>
    %176 = vector.extract_strided_slice %163 {offsets = [0, 64], sizes = [8, 32], strides = [1, 1]} : vector<8x128xf32> to vector<8x32xf32>
    %177 = math.tanh %176 : vector<8x32xf32>
    %178 = vector.extract_strided_slice %163 {offsets = [0, 96], sizes = [8, 32], strides = [1, 1]} : vector<8x128xf32> to vector<8x32xf32>
    %179 = arith.negf %178 : vector<8x32xf32>
    %180 = math.exp %179 : vector<8x32xf32>
    %cst_49 = arith.constant 1.000000e+00 : f32
    %181 = vector.broadcast %cst_49 : f32 to vector<8x32xf32>
    %182 = arith.addf %181, %180 : vector<8x32xf32>
    %183 = arith.divf %181, %182 : vector<8x32xf32>
    %184 = arith.mulf %175, %147 : vector<8x32xf32>
    %185 = arith.mulf %169, %177 : vector<8x32xf32>
    %186 = arith.addf %184, %185 : vector<8x32xf32>
    %187 = math.tanh %186 : vector<8x32xf32>
    %188 = arith.mulf %183, %187 : vector<8x32xf32>
    %189 = arith.subf %188, %158 : vector<8x32xf32>
    %190 = arith.mulf %153, %189 : vector<8x32xf32>
    %191 = arith.addf %158, %190 : vector<8x32xf32>
    %192 = arith.subf %186, %147 : vector<8x32xf32>
    %193 = arith.mulf %153, %192 : vector<8x32xf32>
    %194 = arith.addf %147, %193 : vector<8x32xf32>
    %c4_i32 = arith.constant 4 : i32
    %195 = arith.index_cast %c4_i32 : i32 to index
    %c0_50 = arith.constant 0 : index
    %c0_51 = arith.constant 0 : index
    %196 = vector.load %arg2[%195, %c0_50, %c0_51] : memref<8x8x32xf32, #tpu.memory_space<vmem>>, vector<1x8x32xf32>
    %197 = vector.shape_cast %196 : vector<1x8x32xf32> to vector<8x32xf32>
    %198 = arith.index_cast %c4_i32 : i32 to index
    %c0_52 = arith.constant 0 : index
    %c0_53 = arith.constant 0 : index
    %199 = vector.load %arg3[%198, %c0_52, %c0_53] : memref<8x8x32xf32, #tpu.memory_space<vmem>>, vector<1x8x32xf32>
    %200 = vector.shape_cast %199 : vector<1x8x32xf32> to vector<8x32xf32>
    %cst_54 = arith.constant dense<0.000000e+00> : vector<8x32xf32>
    %201 = tpu.matmul %191, %1, %cst_54 {dimension_numbers = #tpu.dot_dimension_numbers<[1], [0], [0], [1], [0, 0, 1, 1], [], []>} : vector<8x32xf32>, vector<32x32xf32>, vector<8x32xf32> -> vector<8x32xf32>
    %202 = arith.addf %201, %4 : vector<8x32xf32>
    %203 = math.tanh %202 : vector<8x32xf32>
    %204 = arith.mulf %197, %203 : vector<8x32xf32>
    %205 = arith.addf %191, %204 : vector<8x32xf32>
    %206 = arith.index_cast %c4_i32 : i32 to index
    %c0_55 = arith.constant 0 : index
    %c0_56 = arith.constant 0 : index
    %207 = vector.load %arg1[%206, %c0_55, %c0_56] : memref<8x8x128xf32, #tpu.memory_space<vmem>>, vector<1x8x128xf32>
    %208 = vector.shape_cast %207 : vector<1x8x128xf32> to vector<8x128xf32>
    %cst_57 = arith.constant dense<0.000000e+00> : vector<8x128xf32>
    %209 = tpu.matmul %205, %0, %cst_57 {dimension_numbers = #tpu.dot_dimension_numbers<[1], [0], [0], [1], [0, 0, 1, 1], [], []>} : vector<8x32xf32>, vector<32x128xf32>, vector<8x128xf32> -> vector<8x128xf32>
    %210 = arith.addf %208, %209 : vector<8x128xf32>
    %211 = vector.extract_strided_slice %210 {offsets = [0, 0], sizes = [8, 32], strides = [1, 1]} : vector<8x128xf32> to vector<8x32xf32>
    %212 = arith.negf %211 : vector<8x32xf32>
    %213 = math.exp %212 : vector<8x32xf32>
    %cst_58 = arith.constant 1.000000e+00 : f32
    %214 = vector.broadcast %cst_58 : f32 to vector<8x32xf32>
    %215 = arith.addf %214, %213 : vector<8x32xf32>
    %216 = arith.divf %214, %215 : vector<8x32xf32>
    %217 = vector.extract_strided_slice %210 {offsets = [0, 32], sizes = [8, 32], strides = [1, 1]} : vector<8x128xf32> to vector<8x32xf32>
    %218 = arith.negf %217 : vector<8x32xf32>
    %219 = math.exp %218 : vector<8x32xf32>
    %cst_59 = arith.constant 1.000000e+00 : f32
    %220 = vector.broadcast %cst_59 : f32 to vector<8x32xf32>
    %221 = arith.addf %220, %219 : vector<8x32xf32>
    %222 = arith.divf %220, %221 : vector<8x32xf32>
    %223 = vector.extract_strided_slice %210 {offsets = [0, 64], sizes = [8, 32], strides = [1, 1]} : vector<8x128xf32> to vector<8x32xf32>
    %224 = math.tanh %223 : vector<8x32xf32>
    %225 = vector.extract_strided_slice %210 {offsets = [0, 96], sizes = [8, 32], strides = [1, 1]} : vector<8x128xf32> to vector<8x32xf32>
    %226 = arith.negf %225 : vector<8x32xf32>
    %227 = math.exp %226 : vector<8x32xf32>
    %cst_60 = arith.constant 1.000000e+00 : f32
    %228 = vector.broadcast %cst_60 : f32 to vector<8x32xf32>
    %229 = arith.addf %228, %227 : vector<8x32xf32>
    %230 = arith.divf %228, %229 : vector<8x32xf32>
    %231 = arith.mulf %222, %194 : vector<8x32xf32>
    %232 = arith.mulf %216, %224 : vector<8x32xf32>
    %233 = arith.addf %231, %232 : vector<8x32xf32>
    %234 = math.tanh %233 : vector<8x32xf32>
    %235 = arith.mulf %230, %234 : vector<8x32xf32>
    %236 = arith.subf %235, %205 : vector<8x32xf32>
    %237 = arith.mulf %200, %236 : vector<8x32xf32>
    %238 = arith.addf %205, %237 : vector<8x32xf32>
    %239 = arith.subf %233, %194 : vector<8x32xf32>
    %240 = arith.mulf %200, %239 : vector<8x32xf32>
    %241 = arith.addf %194, %240 : vector<8x32xf32>
    %c5_i32 = arith.constant 5 : i32
    %242 = arith.index_cast %c5_i32 : i32 to index
    %c0_61 = arith.constant 0 : index
    %c0_62 = arith.constant 0 : index
    %243 = vector.load %arg2[%242, %c0_61, %c0_62] : memref<8x8x32xf32, #tpu.memory_space<vmem>>, vector<1x8x32xf32>
    %244 = vector.shape_cast %243 : vector<1x8x32xf32> to vector<8x32xf32>
    %245 = arith.index_cast %c5_i32 : i32 to index
    %c0_63 = arith.constant 0 : index
    %c0_64 = arith.constant 0 : index
    %246 = vector.load %arg3[%245, %c0_63, %c0_64] : memref<8x8x32xf32, #tpu.memory_space<vmem>>, vector<1x8x32xf32>
    %247 = vector.shape_cast %246 : vector<1x8x32xf32> to vector<8x32xf32>
    %cst_65 = arith.constant dense<0.000000e+00> : vector<8x32xf32>
    %248 = tpu.matmul %238, %1, %cst_65 {dimension_numbers = #tpu.dot_dimension_numbers<[1], [0], [0], [1], [0, 0, 1, 1], [], []>} : vector<8x32xf32>, vector<32x32xf32>, vector<8x32xf32> -> vector<8x32xf32>
    %249 = arith.addf %248, %4 : vector<8x32xf32>
    %250 = math.tanh %249 : vector<8x32xf32>
    %251 = arith.mulf %244, %250 : vector<8x32xf32>
    %252 = arith.addf %238, %251 : vector<8x32xf32>
    %253 = arith.index_cast %c5_i32 : i32 to index
    %c0_66 = arith.constant 0 : index
    %c0_67 = arith.constant 0 : index
    %254 = vector.load %arg1[%253, %c0_66, %c0_67] : memref<8x8x128xf32, #tpu.memory_space<vmem>>, vector<1x8x128xf32>
    %255 = vector.shape_cast %254 : vector<1x8x128xf32> to vector<8x128xf32>
    %cst_68 = arith.constant dense<0.000000e+00> : vector<8x128xf32>
    %256 = tpu.matmul %252, %0, %cst_68 {dimension_numbers = #tpu.dot_dimension_numbers<[1], [0], [0], [1], [0, 0, 1, 1], [], []>} : vector<8x32xf32>, vector<32x128xf32>, vector<8x128xf32> -> vector<8x128xf32>
    %257 = arith.addf %255, %256 : vector<8x128xf32>
    %258 = vector.extract_strided_slice %257 {offsets = [0, 0], sizes = [8, 32], strides = [1, 1]} : vector<8x128xf32> to vector<8x32xf32>
    %259 = arith.negf %258 : vector<8x32xf32>
    %260 = math.exp %259 : vector<8x32xf32>
    %cst_69 = arith.constant 1.000000e+00 : f32
    %261 = vector.broadcast %cst_69 : f32 to vector<8x32xf32>
    %262 = arith.addf %261, %260 : vector<8x32xf32>
    %263 = arith.divf %261, %262 : vector<8x32xf32>
    %264 = vector.extract_strided_slice %257 {offsets = [0, 32], sizes = [8, 32], strides = [1, 1]} : vector<8x128xf32> to vector<8x32xf32>
    %265 = arith.negf %264 : vector<8x32xf32>
    %266 = math.exp %265 : vector<8x32xf32>
    %cst_70 = arith.constant 1.000000e+00 : f32
    %267 = vector.broadcast %cst_70 : f32 to vector<8x32xf32>
    %268 = arith.addf %267, %266 : vector<8x32xf32>
    %269 = arith.divf %267, %268 : vector<8x32xf32>
    %270 = vector.extract_strided_slice %257 {offsets = [0, 64], sizes = [8, 32], strides = [1, 1]} : vector<8x128xf32> to vector<8x32xf32>
    %271 = math.tanh %270 : vector<8x32xf32>
    %272 = vector.extract_strided_slice %257 {offsets = [0, 96], sizes = [8, 32], strides = [1, 1]} : vector<8x128xf32> to vector<8x32xf32>
    %273 = arith.negf %272 : vector<8x32xf32>
    %274 = math.exp %273 : vector<8x32xf32>
    %cst_71 = arith.constant 1.000000e+00 : f32
    %275 = vector.broadcast %cst_71 : f32 to vector<8x32xf32>
    %276 = arith.addf %275, %274 : vector<8x32xf32>
    %277 = arith.divf %275, %276 : vector<8x32xf32>
    %278 = arith.mulf %269, %241 : vector<8x32xf32>
    %279 = arith.mulf %263, %271 : vector<8x32xf32>
    %280 = arith.addf %278, %279 : vector<8x32xf32>
    %281 = math.tanh %280 : vector<8x32xf32>
    %282 = arith.mulf %277, %281 : vector<8x32xf32>
    %283 = arith.subf %282, %252 : vector<8x32xf32>
    %284 = arith.mulf %247, %283 : vector<8x32xf32>
    %285 = arith.addf %252, %284 : vector<8x32xf32>
    %286 = arith.subf %280, %241 : vector<8x32xf32>
    %287 = arith.mulf %247, %286 : vector<8x32xf32>
    %288 = arith.addf %241, %287 : vector<8x32xf32>
    %c6_i32 = arith.constant 6 : i32
    %289 = arith.index_cast %c6_i32 : i32 to index
    %c0_72 = arith.constant 0 : index
    %c0_73 = arith.constant 0 : index
    %290 = vector.load %arg2[%289, %c0_72, %c0_73] : memref<8x8x32xf32, #tpu.memory_space<vmem>>, vector<1x8x32xf32>
    %291 = vector.shape_cast %290 : vector<1x8x32xf32> to vector<8x32xf32>
    %292 = arith.index_cast %c6_i32 : i32 to index
    %c0_74 = arith.constant 0 : index
    %c0_75 = arith.constant 0 : index
    %293 = vector.load %arg3[%292, %c0_74, %c0_75] : memref<8x8x32xf32, #tpu.memory_space<vmem>>, vector<1x8x32xf32>
    %294 = vector.shape_cast %293 : vector<1x8x32xf32> to vector<8x32xf32>
    %cst_76 = arith.constant dense<0.000000e+00> : vector<8x32xf32>
    %295 = tpu.matmul %285, %1, %cst_76 {dimension_numbers = #tpu.dot_dimension_numbers<[1], [0], [0], [1], [0, 0, 1, 1], [], []>} : vector<8x32xf32>, vector<32x32xf32>, vector<8x32xf32> -> vector<8x32xf32>
    %296 = arith.addf %295, %4 : vector<8x32xf32>
    %297 = math.tanh %296 : vector<8x32xf32>
    %298 = arith.mulf %291, %297 : vector<8x32xf32>
    %299 = arith.addf %285, %298 : vector<8x32xf32>
    %300 = arith.index_cast %c6_i32 : i32 to index
    %c0_77 = arith.constant 0 : index
    %c0_78 = arith.constant 0 : index
    %301 = vector.load %arg1[%300, %c0_77, %c0_78] : memref<8x8x128xf32, #tpu.memory_space<vmem>>, vector<1x8x128xf32>
    %302 = vector.shape_cast %301 : vector<1x8x128xf32> to vector<8x128xf32>
    %cst_79 = arith.constant dense<0.000000e+00> : vector<8x128xf32>
    %303 = tpu.matmul %299, %0, %cst_79 {dimension_numbers = #tpu.dot_dimension_numbers<[1], [0], [0], [1], [0, 0, 1, 1], [], []>} : vector<8x32xf32>, vector<32x128xf32>, vector<8x128xf32> -> vector<8x128xf32>
    %304 = arith.addf %302, %303 : vector<8x128xf32>
    %305 = vector.extract_strided_slice %304 {offsets = [0, 0], sizes = [8, 32], strides = [1, 1]} : vector<8x128xf32> to vector<8x32xf32>
    %306 = arith.negf %305 : vector<8x32xf32>
    %307 = math.exp %306 : vector<8x32xf32>
    %cst_80 = arith.constant 1.000000e+00 : f32
    %308 = vector.broadcast %cst_80 : f32 to vector<8x32xf32>
    %309 = arith.addf %308, %307 : vector<8x32xf32>
    %310 = arith.divf %308, %309 : vector<8x32xf32>
    %311 = vector.extract_strided_slice %304 {offsets = [0, 32], sizes = [8, 32], strides = [1, 1]} : vector<8x128xf32> to vector<8x32xf32>
    %312 = arith.negf %311 : vector<8x32xf32>
    %313 = math.exp %312 : vector<8x32xf32>
    %cst_81 = arith.constant 1.000000e+00 : f32
    %314 = vector.broadcast %cst_81 : f32 to vector<8x32xf32>
    %315 = arith.addf %314, %313 : vector<8x32xf32>
    %316 = arith.divf %314, %315 : vector<8x32xf32>
    %317 = vector.extract_strided_slice %304 {offsets = [0, 64], sizes = [8, 32], strides = [1, 1]} : vector<8x128xf32> to vector<8x32xf32>
    %318 = math.tanh %317 : vector<8x32xf32>
    %319 = vector.extract_strided_slice %304 {offsets = [0, 96], sizes = [8, 32], strides = [1, 1]} : vector<8x128xf32> to vector<8x32xf32>
    %320 = arith.negf %319 : vector<8x32xf32>
    %321 = math.exp %320 : vector<8x32xf32>
    %cst_82 = arith.constant 1.000000e+00 : f32
    %322 = vector.broadcast %cst_82 : f32 to vector<8x32xf32>
    %323 = arith.addf %322, %321 : vector<8x32xf32>
    %324 = arith.divf %322, %323 : vector<8x32xf32>
    %325 = arith.mulf %316, %288 : vector<8x32xf32>
    %326 = arith.mulf %310, %318 : vector<8x32xf32>
    %327 = arith.addf %325, %326 : vector<8x32xf32>
    %328 = math.tanh %327 : vector<8x32xf32>
    %329 = arith.mulf %324, %328 : vector<8x32xf32>
    %330 = arith.subf %329, %299 : vector<8x32xf32>
    %331 = arith.mulf %294, %330 : vector<8x32xf32>
    %332 = arith.addf %299, %331 : vector<8x32xf32>
    %333 = arith.subf %327, %288 : vector<8x32xf32>
    %334 = arith.mulf %294, %333 : vector<8x32xf32>
    %335 = arith.addf %288, %334 : vector<8x32xf32>
    %c7_i32 = arith.constant 7 : i32
    %336 = arith.index_cast %c7_i32 : i32 to index
    %c0_83 = arith.constant 0 : index
    %c0_84 = arith.constant 0 : index
    %337 = vector.load %arg2[%336, %c0_83, %c0_84] : memref<8x8x32xf32, #tpu.memory_space<vmem>>, vector<1x8x32xf32>
    %338 = vector.shape_cast %337 : vector<1x8x32xf32> to vector<8x32xf32>
    %339 = arith.index_cast %c7_i32 : i32 to index
    %c0_85 = arith.constant 0 : index
    %c0_86 = arith.constant 0 : index
    %340 = vector.load %arg3[%339, %c0_85, %c0_86] : memref<8x8x32xf32, #tpu.memory_space<vmem>>, vector<1x8x32xf32>
    %341 = vector.shape_cast %340 : vector<1x8x32xf32> to vector<8x32xf32>
    %cst_87 = arith.constant dense<0.000000e+00> : vector<8x32xf32>
    %342 = tpu.matmul %332, %1, %cst_87 {dimension_numbers = #tpu.dot_dimension_numbers<[1], [0], [0], [1], [0, 0, 1, 1], [], []>} : vector<8x32xf32>, vector<32x32xf32>, vector<8x32xf32> -> vector<8x32xf32>
    %343 = arith.addf %342, %4 : vector<8x32xf32>
    %344 = math.tanh %343 : vector<8x32xf32>
    %345 = arith.mulf %338, %344 : vector<8x32xf32>
    %346 = arith.addf %332, %345 : vector<8x32xf32>
    %347 = arith.index_cast %c7_i32 : i32 to index
    %c0_88 = arith.constant 0 : index
    %c0_89 = arith.constant 0 : index
    %348 = vector.load %arg1[%347, %c0_88, %c0_89] : memref<8x8x128xf32, #tpu.memory_space<vmem>>, vector<1x8x128xf32>
    %349 = vector.shape_cast %348 : vector<1x8x128xf32> to vector<8x128xf32>
    %cst_90 = arith.constant dense<0.000000e+00> : vector<8x128xf32>
    %350 = tpu.matmul %346, %0, %cst_90 {dimension_numbers = #tpu.dot_dimension_numbers<[1], [0], [0], [1], [0, 0, 1, 1], [], []>} : vector<8x32xf32>, vector<32x128xf32>, vector<8x128xf32> -> vector<8x128xf32>
    %351 = arith.addf %349, %350 : vector<8x128xf32>
    %352 = vector.extract_strided_slice %351 {offsets = [0, 0], sizes = [8, 32], strides = [1, 1]} : vector<8x128xf32> to vector<8x32xf32>
    %353 = arith.negf %352 : vector<8x32xf32>
    %354 = math.exp %353 : vector<8x32xf32>
    %cst_91 = arith.constant 1.000000e+00 : f32
    %355 = vector.broadcast %cst_91 : f32 to vector<8x32xf32>
    %356 = arith.addf %355, %354 : vector<8x32xf32>
    %357 = arith.divf %355, %356 : vector<8x32xf32>
    %358 = vector.extract_strided_slice %351 {offsets = [0, 32], sizes = [8, 32], strides = [1, 1]} : vector<8x128xf32> to vector<8x32xf32>
    %359 = arith.negf %358 : vector<8x32xf32>
    %360 = math.exp %359 : vector<8x32xf32>
    %cst_92 = arith.constant 1.000000e+00 : f32
    %361 = vector.broadcast %cst_92 : f32 to vector<8x32xf32>
    %362 = arith.addf %361, %360 : vector<8x32xf32>
    %363 = arith.divf %361, %362 : vector<8x32xf32>
    %364 = vector.extract_strided_slice %351 {offsets = [0, 64], sizes = [8, 32], strides = [1, 1]} : vector<8x128xf32> to vector<8x32xf32>
    %365 = math.tanh %364 : vector<8x32xf32>
    %366 = vector.extract_strided_slice %351 {offsets = [0, 96], sizes = [8, 32], strides = [1, 1]} : vector<8x128xf32> to vector<8x32xf32>
    %367 = arith.negf %366 : vector<8x32xf32>
    %368 = math.exp %367 : vector<8x32xf32>
    %cst_93 = arith.constant 1.000000e+00 : f32
    %369 = vector.broadcast %cst_93 : f32 to vector<8x32xf32>
    %370 = arith.addf %369, %368 : vector<8x32xf32>
    %371 = arith.divf %369, %370 : vector<8x32xf32>
    %372 = arith.mulf %363, %335 : vector<8x32xf32>
    %373 = arith.mulf %357, %365 : vector<8x32xf32>
    %374 = arith.addf %372, %373 : vector<8x32xf32>
    %375 = math.tanh %374 : vector<8x32xf32>
    %376 = arith.mulf %371, %375 : vector<8x32xf32>
    %377 = arith.subf %376, %346 : vector<8x32xf32>
    %378 = arith.mulf %341, %377 : vector<8x32xf32>
    %379 = arith.addf %346, %378 : vector<8x32xf32>
    %380 = arith.subf %374, %335 : vector<8x32xf32>
    %381 = arith.mulf %341, %380 : vector<8x32xf32>
    %382 = arith.addf %335, %381 : vector<8x32xf32>
    %c8_i32 = arith.constant 8 : i32
    %c0_94 = arith.constant 0 : index
    %c0_95 = arith.constant 0 : index
    %383 = vector.load %arg7[%c0_94, %c0_95] : memref<32x128xf32, #tpu.memory_space<vmem>>, vector<32x128xf32>
    %cst_96 = arith.constant dense<0.000000e+00> : vector<8x128xf32>
    %384 = tpu.matmul %379, %383, %cst_96 {dimension_numbers = #tpu.dot_dimension_numbers<[1], [0], [0], [1], [0, 0, 1, 1], [], []>} : vector<8x32xf32>, vector<32x128xf32>, vector<8x128xf32> -> vector<8x128xf32>
    %c0_97 = arith.constant 0 : index
    %c0_98 = arith.constant 0 : index
    %385 = vector.load %arg8[%c0_97, %c0_98] : memref<1x128xf32, #tpu.memory_space<vmem>>, vector<1x128xf32>
    %386 = vector.broadcast %385 : vector<1x128xf32> to vector<8x128xf32>
    %387 = arith.addf %384, %386 : vector<8x128xf32>
    %388 = math.tanh %387 : vector<8x128xf32>
    %c0_99 = arith.constant 0 : index
    %c0_100 = arith.constant 0 : index
    %389 = vector.load %arg9[%c0_99, %c0_100] : memref<128x128xf32, #tpu.memory_space<vmem>>, vector<128x128xf32>
    %cst_101 = arith.constant dense<0.000000e+00> : vector<8x128xf32>
    %390 = tpu.matmul %388, %389, %cst_101 {dimension_numbers = #tpu.dot_dimension_numbers<[1], [0], [0], [1], [0, 0, 1, 1], [], []>} : vector<8x128xf32>, vector<128x128xf32>, vector<8x128xf32> -> vector<8x128xf32>
    %c0_102 = arith.constant 0 : index
    %c0_103 = arith.constant 0 : index
    %391 = vector.load %arg10[%c0_102, %c0_103] : memref<1x128xf32, #tpu.memory_space<vmem>>, vector<1x128xf32>
    %392 = vector.broadcast %391 : vector<1x128xf32> to vector<8x128xf32>
    %393 = arith.addf %390, %392 : vector<8x128xf32>
    %c0_104 = arith.constant 0 : index
    %c0_105 = arith.constant 0 : index
    %394 = vector.load %arg11[%c0_104, %c0_105] : memref<8x128xf32, #tpu.memory_space<vmem>>, vector<8x128xf32>
    tpu.vector_store %arg11[%c0_104, %c0_105], %393 {strides = array<i32>} : memref<8x128xf32, #tpu.memory_space<vmem>>, vector<8x128xf32>,
    return
  }
  func.func @transform_0(%arg0: i32) -> (i32, i32, i32) {
    %c0_i32 = arith.constant 0 : i32
    %c0_i32_0 = arith.constant 0 : i32
    %c0_i32_1 = arith.constant 0 : i32
    return %c0_i32, %arg0, %c0_i32_0 : i32, i32, i32
  }
  func.func @transform_1(%arg0: i32) -> (i32, i32, i32) {
    %c0_i32 = arith.constant 0 : i32
    %c0_i32_0 = arith.constant 0 : i32
    %c0_i32_1 = arith.constant 0 : i32
    return %c0_i32, %arg0, %c0_i32_0 : i32, i32, i32
  }
  func.func @transform_2(%arg0: i32) -> (i32, i32, i32) {
    %c0_i32 = arith.constant 0 : i32
    %c0_i32_0 = arith.constant 0 : i32
    %c0_i32_1 = arith.constant 0 : i32
    return %c0_i32, %arg0, %c0_i32_0 : i32, i32, i32
  }
  func.func @transform_3(%arg0: i32) -> (i32, i32) {
    %c0_i32 = arith.constant 0 : i32
    %c0_i32_0 = arith.constant 0 : i32
    %c0_i32_1 = arith.constant 0 : i32
    return %c0_i32, %c0_i32_0 : i32, i32
  }
  func.func @transform_4(%arg0: i32) -> (i32, i32) {
    %c0_i32 = arith.constant 0 : i32
    %c0_i32_0 = arith.constant 0 : i32
    %c0_i32_1 = arith.constant 0 : i32
    return %c0_i32, %c0_i32_0 : i32, i32
  }
  func.func @transform_5(%arg0: i32) -> (i32, i32) {
    %c0_i32 = arith.constant 0 : i32
    %c0_i32_0 = arith.constant 0 : i32
    %c0_i32_1 = arith.constant 0 : i32
    return %c0_i32, %c0_i32_0 : i32, i32
  }
  func.func @transform_6(%arg0: i32) -> (i32, i32) {
    %c0_i32 = arith.constant 0 : i32
    %c0_i32_0 = arith.constant 0 : i32
    %c0_i32_1 = arith.constant 0 : i32
    return %c0_i32, %c0_i32_0 : i32, i32
  }
  func.func @transform_7(%arg0: i32) -> (i32, i32) {
    %c0_i32 = arith.constant 0 : i32
    %c0_i32_0 = arith.constant 0 : i32
    %c0_i32_1 = arith.constant 0 : i32
    return %c0_i32, %c0_i32_0 : i32, i32
  }
  func.func @transform_8(%arg0: i32) -> (i32, i32) {
    %c0_i32 = arith.constant 0 : i32
    %c0_i32_0 = arith.constant 0 : i32
    %c0_i32_1 = arith.constant 0 : i32
    return %c0_i32, %c0_i32_0 : i32, i32
  }
  func.func @transform_9(%arg0: i32) -> (i32, i32) {
    %c0_i32 = arith.constant 0 : i32
    %c0_i32_0 = arith.constant 0 : i32
    %c0_i32_1 = arith.constant 0 : i32
    return %c0_i32, %c0_i32_0 : i32, i32
  }
  func.func @transform_10(%arg0: i32) -> (i32, i32) {
    %c0_i32 = arith.constant 0 : i32
    %c0_i32_0 = arith.constant 0 : i32
    return %arg0, %c0_i32 : i32, i32
  }
}

</mosaic_0001>

<bundles_post_ra>
// kernel: _lambda_.1
= control target key start
LH: loop header
LB: loop body
LE: loop exit
PB: predicated region body
PF: predicated region fallthrough
CT: control target
= control target key end

     0   :  { %v2413_v0 = vmov 0.0|0.0   ;;  %vm2414_vm0 = vmmov 0   ;;  %v2415_v4 = vmov 0.0   ;;  %vm52_vm1 = vcmask 261120   ;;  %s2416_s12 = smov 64   ;;  %s2417_s13 = smov 32   ;;  %s2846_s4 = inlined_call_operand.vmem [shape: f32[32,32], index: 4, kind: input, shape index: {}]   ;;  %s2847_s3 = inlined_call_operand.vmem [shape: f32[32,128], index: 3, kind: input, shape index: {}]   ;;  %s2848_s5 = inlined_call_operand.vmem [shape: f32[1,32], index: 5, kind: input, shape index: {}]   ;;  %s2849_s1 = inlined_call_operand.vmem [shape: f32[8,8,32], index: 1, kind: input, shape index: {}]   ;;  %s2850_s0 = inlined_call_operand.vmem [shape: f32[8,8,128], index: 0, kind: input, shape index: {}]   ;;  %s2851_s2 = inlined_call_operand.vmem [shape: f32[8,8,32], index: 2, kind: input, shape index: {}]   ;;  %s2852_s6 = inlined_call_operand.vmem [shape: f32[32,128], index: 6, kind: input, shape index: {}]   ;;  %s2853_s8 = inlined_call_operand.vmem [shape: f32[128,128], index: 8, kind: input, shape index: {}]   ;;  %s2854_s7 = inlined_call_operand.vmem [shape: f32[1,128], index: 7, kind: input, shape index: {}]   ;;  %s2855_s9 = inlined_call_operand.vmem [shape: f32[1,128], index: 9, kind: input, shape index: {}]   ;;  %s2856_s10 = inlined_call_operand.vmem [shape: f32[8,128], index: 10, kind: output, shape index: {}]  }
   0x1   :  { %2199 = vmatprep.subr.bf16.mxu0 %v2413_v0  ;;  %v39_v1 = vld [vmem:[%s2846_s4] sm:$0xff]  ;;  %v40_v2 = vld [vmem:[%s2846_s4 + $0x8] sm:$0xff]  ;;  %v41_v3 = vld [vmem:[%s2846_s4 + $0x10] sm:$0xff]  ;;  %1985 = vmatprep.mubr.msk.f32.mxu0 %vm2414_vm0, %v2415_v4  ;;  %s2418_s14 = smov 96  }
   0x2   :  { %v2486_v5 = vpack.c.bf16 %v40_v2, %v39_v1  ;;  %v42_v6 = vld [vmem:[%s2846_s4 + $0x18] sm:$0xff]  ;;  %2217 = vmatprep.subr.bf16.mxu1 %v2413_v0  ;;  %2018 = vmatprep.mubr.msk.f32.mxu1 %vm2414_vm0, %v2415_v4  ;;  %v35_v8 = vld [vmem:[%s2847_s3] sm:$0xff]  ;;  %v36_v9 = vld [vmem:[%s2847_s3 + $0x8] sm:$0xff] }
   0x3   :  { %v2495_v7 = vpack.c.bf16 %v42_v6, %v41_v3  ;;  %v37_v10 = vld [vmem:[%s2847_s3 + $0x10] sm:$0xff]  ;;  %v2512_v11 = vpack.c.bf16 %v36_v9, %v35_v8  ;;  %v38_v12 = vld [vmem:[%s2847_s3 + $0x18] sm:$0xff]  ;;  %v2530_v14 = vld [vmem:[%s2848_s5] ss:$0 sm:$0xff] }
   0x4   :  { %2201 = vmatpush3.bf16.msra.mxu0 %v2486_v5  ;;  %v2518_v13 = vpack.c.bf16 %v38_v12, %v37_v10  ;;  %v50_v18 = vld [vmem:[%s2849_s1] sm:$0xff]  ;;  %v1830_v49 = vld [vmem:[%s2849_s1 + $0x8] sm:$0xff] }
   0x5   :  { %2202 = vmatprep.subr.bf16.mxu0 %v2413_v0  ;;  %2219 = vmatpush3.bf16.msra.mxu1 %v2512_v11  ;;  %v129_v21 = vld [vmem:[%s2850_s0] sm:$0xff]  ;;  %v1833_v53 = vld [vmem:[%s2850_s0 + $0x8] sm:$0xff] }
   0x6   :  { %2220 = vmatprep.subr.bf16.mxu1 %v2413_v0  ;;  %v51_v40 = vld [vmem:[%s2851_s2] sm:$0xff]  ;;  %v1831_v12 = vld [vmem:[%s2851_s2 + $0x8] sm:$0xff] }
   0x8   :  { %2204 = vmatpush3.bf16.msra.mxu0 %v2495_v7 }
   0x9   :  { %2205 = vmatprep.subr.bf16.mxu0 %v2413_v0  ;;  %2222 = vmatpush3.bf16.msra.mxu1 %v2518_v13 }
   0xa   :  { %2229 = vmatprep.subr.bf16.mxu1 %v2413_v0 }
   0xb   :  { %1986 = vmatmul.mubr.f32.vlgmr.msra.gmra.mrb[0].mxu0 %v2415_v4 }
   0xc   :  { %1996 = vmatprep.mubr.msk.f32.mxu0 %vm2414_vm0, %v2415_v4  ;;  %2207 = vmatpush3.bf16.msra.mxu0 %v2512_v11 }
   0xd   :  { %2208 = vmatprep.subr.bf16.mxu0 %v2413_v0 }
  0x10   :  { %2210 = vmatpush3.bf16.msra.mxu0 %v2518_v13 }
  0x11   :  { %2211 = vmatprep.subr.bf16.mxu0 %v2413_v0 }
  0xde   :  { %v122_v15 = vpop.f32.mrb[0].mxu0 }
  0xdf   :  { %v123_v16 = vadd.f32 %v2530_v14, %v122_v15  ;;  %v1987_v17 = vpop.f32.mrb[1].mxu0 }
  0xe1   :  { %2331 = vtanh.f32 %v123_v16 }
  0xeb   :  { %v2332_v19 = vpop.eup %2331 }
  0xec   :  { %v127_v20 = vmul.f32 %v2332_v19, %v50_v18 }
  0xee   :  { %1997 = vmatmul.mubr.msk.f32.vlgmr.msra.gmra.mrb[2].mxu0 %vm52_vm1, %v127_v20 }
  0xef   :  { %2213 = vmatpush3.bf16.msra.mxu0 %v2486_v5  ;;  %2007 = vmatprep.mubr.msk.f32.mxu0 %vm2414_vm0, %v2415_v4 }
  0xf0   :  { %2214 = vmatprep.subr.bf16.mxu0 %v2413_v0 }
  0xf3   :  { %2216 = vmatpush3.bf16.msra.mxu0 %v2495_v7 }
  0xf4   :  { %2223 = vmatprep.subr.bf16.mxu0 %v2413_v0 }
 0x1c1   :  { %v199_v22 = vpop.f32.mrb[2].mxu0 }
 0x1c2   :  { %v203_v23 = vadd.f32 %v199_v22, %v129_v21  ;;  %v1998_v24 = vpop.f32.mrb[3].mxu0 }
 0x1c4   :  { %2333 = vtanh.f32 %v203_v23  ;;  %v1829_v26 = vmul.f32 -1.442695, %v203_v23 }
 0x1c6   :  { %2335 = vpow2.f32 %v1829_v26 }
 0x1ce   :  { %v2334_v25 = vpop.eup %2333 }
 0x1cf   :  { %213 = vrot.lane.b32.xlu0 %v2334_v25, %s2416_s12 }
 0x1d0   :  { %v2336_v27 = vpop.eup %2335 }
 0x1d1   :  { %v207_v28 = vadd.f32 1.0, %v2336_v27  ;;  %v1836_v27 = vld [vmem:[%s2849_s1 + $0x10] sm:$0xff] }
 0x1d3   :  { %2337 = vrcp.f32 %v207_v28 }
 0x1dd   :  { %v2338_v29 = vpop.eup %2337 }
 0x1de   :  { %v211_v32 = vmul.f32 0.0, %v2338_v29 }
 0x241   :  { %v214_v30 = vpop.permute.xlu0 %213 }
 0x242   :  { %v216_v31 = vmul.f32 %v2338_v29, %v214_v30 }
 0x244   :  { %218 = vrot.lane.b32.xlu0 %v216_v31, %s2417_s13  ;;  %v1839_v31 = vld [vmem:[%s2850_s0 + $0x10] sm:$0xff] }
 0x2b6   :  { %v219_v33 = vpop.permute.xlu0 %218 }
 0x2b7   :  { %v221_v34 = vadd.f32 %v219_v33, %v211_v32 }
 0x2b9   :  { %2339 = vtanh.f32 %v221_v34 }
 0x2c3   :  { %v2340_v35 = vpop.eup %2339 }
 0x2c4   :  { %224 = vrot.lane.b32.xlu1 %v2340_v35, %s2416_s12 }
 0x2c8   :  { %228 = vrot.lane.b32.xlu1 %v127_v20, %s2418_s14 }
 0x2cc   :  { %239 = vrot.lane.b32.xlu1 %v221_v34, %s2418_s14 }
 0x336   :  { %v225_v36 = vpop.permute.xlu1 %224 }
 0x337   :  { %v227_v37 = vmul.f32 %v2338_v29, %v225_v36 }
 0x33a   :  { %v229_v38 = vpop.permute.xlu1 %228 }
 0x33b   :  { %v231_v39 = vsub.f32 %v227_v37, %v229_v38 }
 0x33d   :  { %233 = vrot.lane.b32.xlu0 %v231_v39, %s2417_s13 }
 0x33e   :  { %v240_v41 = vpop.permute.xlu1 %239 }
 0x33f   :  { %v242_v42 = vmul.f32 %v240_v41, %v51_v40 }
 0x341   :  { %408 = vrot.lane.b32.xlu1 %v242_v42, %s2417_s13 }
 0x3af   :  { %v234_v43 = vpop.permute.xlu0 %233 }
 0x3b0   :  { %v236_v44 = vmul.f32 %v234_v43, %v51_v40 }
 0x3b2   :  { %v237_v45 = vadd.f32 %v236_v44, %v127_v20 }
 0x3b3   :  { %v409_v1 = vpop.permute.xlu1 %408 }
 0x3b4   :  { %2008 = vmatmul.mubr.msk.f32.vlgmr.msra.gmra.mrb[4].mxu0 %vm52_vm1, %v237_v45 }
 0x3b5   :  { %2225 = vmatpush3.bf16.msra.mxu0 %v2486_v5  ;;  %2029 = vmatprep.mubr.msk.f32.mxu0 %vm2414_vm0, %v2415_v4 }
 0x3b6   :  { %2226 = vmatprep.subr.bf16.mxu0 %v2413_v0 }
 0x3b9   :  { %2228 = vmatpush3.bf16.msra.mxu0 %v2495_v7 }
 0x3ba   :  { %2235 = vmatprep.subr.bf16.mxu0 %v2413_v0 }
 0x487   :  { %v317_v46 = vpop.f32.mrb[4].mxu0 }
 0x488   :  { %v318_v47 = vadd.f32 %v2530_v14, %v317_v46  ;;  %v2009_v48 = vpop.f32.mrb[5].mxu0 }
 0x48a   :  { %2341 = vtanh.f32 %v318_v47 }
 0x494   :  { %v2342_v50 = vpop.eup %2341 }
 0x495   :  { %v322_v51 = vmul.f32 %v2342_v50, %v1830_v49  ;;  %v1837_v49 = vld [vmem:[%s2851_s2 + $0x10] sm:$0xff] }
 0x497   :  { %v323_v52 = vadd.f32 %v322_v51, %v237_v45 }
 0x499   :  { %2019 = vmatmul.mubr.msk.f32.vlgmr.msra.gmra.mrb[0].mxu1 %vm52_vm1, %v323_v52 }
 0x49a   :  { %2231 = vmatpush3.bf16.msra.mxu1 %v2512_v11  ;;  %2040 = vmatprep.mubr.msk.f32.mxu1 %vm2414_vm0, %v2415_v4 }
 0x49b   :  { %2232 = vmatprep.subr.bf16.mxu1 %v2413_v0 }
 0x49e   :  { %2234 = vmatpush3.bf16.msra.mxu1 %v2518_v13 }
 0x49f   :  { %2241 = vmatprep.subr.bf16.mxu1 %v2413_v0 }
 0x56c   :  { %v395_v54 = vpop.f32.mrb[0].mxu1 }
 0x56d   :  { %v399_v55 = vadd.f32 %v1833_v53, %v395_v54  ;;  %v2020_v56 = vpop.f32.mrb[1].mxu1 }
 0x56f   :  { %2343 = vtanh.f32 %v399_v55  ;;  %v1835_v58 = vmul.f32 -1.442695, %v399_v55 }
 0x571   :  { %2345 = vpow2.f32 %v1835_v58 }
 0x579   :  { %v2344_v57 = vpop.eup %2343 }
 0x57a   :  { %413 = vrot.lane.b32.xlu0 %v2344_v57, %s2416_s12 }
 0x57b   :  { %v2346_v59 = vpop.eup %2345 }
 0x57c   :  { %v403_v60 = vadd.f32 1.0, %v2346_v59 }
 0x57e   :  { %2347 = vrcp.f32 %v403_v60 }
 0x588   :  { %v2348_v61 = vpop.eup %2347 }
 0x589   :  { %v411_v2 = vmul.f32 %v2348_v61, %v409_v1 }
 0x5ec   :  { %v414_v62 = vpop.permute.xlu0 %413 }
 0x5ed   :  { %v416_v63 = vmul.f32 %v2348_v61, %v414_v62  ;;  %v1842_v62 = vld [vmem:[%s2849_s1 + $0x18] sm:$0xff] }
 0x5ef   :  { %418 = vrot.lane.b32.xlu0 %v416_v63, %s2417_s13 }
 0x5f3   :  { %428 = vrot.lane.b32.xlu0 %v323_v52, %s2418_s14 }
 0x661   :  { %v419_v3 = vpop.permute.xlu0 %418 }
 0x662   :  { %v421_v6 = vadd.f32 %v419_v3, %v411_v2  ;;  %v1845_v3 = vld [vmem:[%s2850_s0 + $0x18] sm:$0xff] }
 0x664   :  { %2349 = vtanh.f32 %v421_v6  ;;  %v438_v8 = vsub.f32 %v421_v6, %v409_v1 }
 0x665   :  { %v429_v10 = vpop.permute.xlu0 %428 }
 0x666   :  { %440 = vrot.lane.b32.xlu0 %v438_v8, %s2418_s14 }
 0x66e   :  { %v2350_v9 = vpop.eup %2349 }
 0x66f   :  { %424 = vrot.lane.b32.xlu1 %v2350_v9, %s2416_s12 }
 0x6d8   :  { %v441_v15 = vpop.permute.xlu0 %440 }
 0x6d9   :  { %v443_v16 = vmul.f32 %v1831_v12, %v441_v15 }
 0x6db   :  { %v444_v17 = vadd.f32 %v443_v16, %v242_v42 }
 0x6dd   :  { %609 = vrot.lane.b32.xlu0 %v444_v17, %s2417_s13 }
 0x6e1   :  { %v425_v18 = vpop.permute.xlu1 %424 }
 0x6e2   :  { %v427_v19 = vmul.f32 %v2348_v61, %v425_v18 }
 0x6e4   :  { %v431_v20 = vsub.f32 %v427_v19, %v429_v10 }
 0x6e6   :  { %433 = vrot.lane.b32.xlu1 %v431_v20, %s2417_s13 }
 0x74f   :  { %v610_v42 = vpop.permute.xlu0 %609 }
 0x758   :  { %v434_v21 = vpop.permute.xlu1 %433 }
 0x759   :  { %v436_v22 = vmul.f32 %v1831_v12, %v434_v21 }
 0x75b   :  { %v437_v23 = vadd.f32 %v436_v22, %v323_v52 }
 0x75d   :  { %2030 = vmatmul.mubr.msk.f32.vlgmr.msra.gmra.mrb[6].mxu0 %vm52_vm1, %v437_v23 }
 0x75e   :  { %2237 = vmatpush3.bf16.msra.mxu0 %v2486_v5  ;;  %2051 = vmatprep.mubr.msk.f32.mxu0 %vm2414_vm0, %v2415_v4 }
 0x75f   :  { %2238 = vmatprep.subr.bf16.mxu0 %v2413_v0 }
 0x762   :  { %2240 = vmatpush3.bf16.msra.mxu0 %v2495_v7 }
 0x763   :  { %2247 = vmatprep.subr.bf16.mxu0 %v2413_v0 }
 0x830   :  { %v518_v24 = vpop.f32.mrb[6].mxu0 }
 0x831   :  { %v519_v25 = vadd.f32 %v2530_v14, %v518_v24  ;;  %v2031_v26 = vpop.f32.mrb[7].mxu0 }
 0x833   :  { %2351 = vtanh.f32 %v519_v25 }
 0x83d   :  { %v2352_v28 = vpop.eup %2351 }
 0x83e   :  { %v523_v29 = vmul.f32 %v2352_v28, %v1836_v27  ;;  %v1843_v27 = vld [vmem:[%s2851_s2 + $0x18] sm:$0xff] }
 0x840   :  { %v524_v30 = vadd.f32 %v523_v29, %v437_v23 }
 0x842   :  { %2041 = vmatmul.mubr.msk.f32.vlgmr.msra.gmra.mrb[2].mxu1 %vm52_vm1, %v524_v30 }
 0x843   :  { %2243 = vmatpush3.bf16.msra.mxu1 %v2512_v11  ;;  %2062 = vmatprep.mubr.msk.f32.mxu1 %vm2414_vm0, %v2415_v4 }
 0x844   :  { %2244 = vmatprep.subr.bf16.mxu1 %v2413_v0 }
 0x847   :  { %2246 = vmatpush3.bf16.msra.mxu1 %v2518_v13 }
 0x848   :  { %2253 = vmatprep.subr.bf16.mxu1 %v2413_v0 }
 0x915   :  { %v596_v32 = vpop.f32.mrb[2].mxu1 }
 0x916   :  { %v600_v33 = vadd.f32 %v1839_v31, %v596_v32  ;;  %v2042_v34 = vpop.f32.mrb[3].mxu1 }
 0x918   :  { %2353 = vtanh.f32 %v600_v33  ;;  %v1841_v36 = vmul.f32 -1.442695, %v600_v33 }
 0x91a   :  { %2355 = vpow2.f32 %v1841_v36 }
 0x922   :  { %v2354_v35 = vpop.eup %2353 }
 0x923   :  { %614 = vrot.lane.b32.xlu1 %v2354_v35, %s2416_s12 }
 0x924   :  { %v2356_v37 = vpop.eup %2355 }
 0x925   :  { %v604_v38 = vadd.f32 1.0, %v2356_v37 }
 0x927   :  { %2357 = vrcp.f32 %v604_v38 }
 0x931   :  { %v2358_v39 = vpop.eup %2357 }
 0x932   :  { %v612_v43 = vmul.f32 %v2358_v39, %v610_v42 }
 0x995   :  { %v615_v40 = vpop.permute.xlu1 %614 }
 0x996   :  { %v617_v41 = vmul.f32 %v2358_v39, %v615_v40  ;;  %v1848_v40 = vld [vmem:[%s2849_s1 + $0x20] sm:$0xff] }
 0x998   :  { %619 = vrot.lane.b32.xlu1 %v617_v41, %s2417_s13 }
 0x99c   :  { %629 = vrot.lane.b32.xlu1 %v524_v30, %s2418_s14 }
 0xa0a   :  { %v620_v44 = vpop.permute.xlu1 %619 }
 0xa0b   :  { %v622_v45 = vadd.f32 %v620_v44, %v612_v43  ;;  %v1851_v44 = vld [vmem:[%s2850_s0 + $0x20] sm:$0xff] }
 0xa0d   :  { %2359 = vtanh.f32 %v622_v45  ;;  %v639_v46 = vsub.f32 %v622_v45, %v610_v42 }
 0xa0e   :  { %v630_v48 = vpop.permute.xlu1 %629 }
 0xa0f   :  { %641 = vrot.lane.b32.xlu1 %v639_v46, %s2418_s14 }
 0xa17   :  { %v2360_v47 = vpop.eup %2359 }
 0xa18   :  { %625 = vrot.lane.b32.xlu0 %v2360_v47, %s2416_s12 }
 0xa81   :  { %v642_v50 = vpop.permute.xlu1 %641 }
 0xa82   :  { %v644_v51 = vmul.f32 %v1837_v49, %v642_v50 }
 0xa84   :  { %v645_v52 = vadd.f32 %v644_v51, %v444_v17 }
 0xa86   :  { %810 = vrot.lane.b32.xlu1 %v645_v52, %s2417_s13 }
 0xa8a   :  { %v626_v53 = vpop.permute.xlu0 %625 }
 0xa8b   :  { %v628_v54 = vmul.f32 %v2358_v39, %v626_v53 }
 0xa8d   :  { %v632_v55 = vsub.f32 %v628_v54, %v630_v48 }
 0xa8f   :  { %634 = vrot.lane.b32.xlu0 %v632_v55, %s2417_s13 }
 0xaf8   :  { %v811_v20 = vpop.permute.xlu1 %810 }
 0xb01   :  { %v635_v56 = vpop.permute.xlu0 %634 }
 0xb02   :  { %v637_v57 = vmul.f32 %v1837_v49, %v635_v56 }
 0xb04   :  { %v638_v58 = vadd.f32 %v637_v57, %v524_v30 }
 0xb06   :  { %2052 = vmatmul.mubr.msk.f32.vlgmr.msra.gmra.mrb[8].mxu0 %vm52_vm1, %v638_v58 }
 0xb07   :  { %2249 = vmatpush3.bf16.msra.mxu0 %v2486_v5  ;;  %2073 = vmatprep.mubr.msk.f32.mxu0 %vm2414_vm0, %v2415_v4 }
 0xb08   :  { %2250 = vmatprep.subr.bf16.mxu0 %v2413_v0 }
 0xb0b   :  { %2252 = vmatpush3.bf16.msra.mxu0 %v2495_v7 }
 0xb0c   :  { %2259 = vmatprep.subr.bf16.mxu0 %v2413_v0 }
 0xbd9   :  { %v719_v59 = vpop.f32.mrb[8].mxu0 }
 0xbda   :  { %v720_v60 = vadd.f32 %v2530_v14, %v719_v59  ;;  %v2053_v61 = vpop.f32.mrb[9].mxu0 }
 0xbdc   :  { %2361 = vtanh.f32 %v720_v60 }
 0xbe6   :  { %v2362_v63 = vpop.eup %2361 }
 0xbe7   :  { %v724_v1 = vmul.f32 %v2362_v63, %v1842_v62  ;;  %v1849_v62 = vld [vmem:[%s2851_s2 + $0x20] sm:$0xff] }
 0xbe9   :  { %v725_v2 = vadd.f32 %v724_v1, %v638_v58 }
 0xbeb   :  { %2063 = vmatmul.mubr.msk.f32.vlgmr.msra.gmra.mrb[4].mxu1 %vm52_vm1, %v725_v2 }
 0xbec   :  { %2255 = vmatpush3.bf16.msra.mxu1 %v2512_v11  ;;  %2084 = vmatprep.mubr.msk.f32.mxu1 %vm2414_vm0, %v2415_v4 }
 0xbed   :  { %2256 = vmatprep.subr.bf16.mxu1 %v2413_v0 }
 0xbf0   :  { %2258 = vmatpush3.bf16.msra.mxu1 %v2518_v13 }
 0xbf1   :  { %2265 = vmatprep.subr.bf16.mxu1 %v2413_v0 }
 0xcbe   :  { %v797_v6 = vpop.f32.mrb[4].mxu1 }
 0xcbf   :  { %v801_v8 = vadd.f32 %v1845_v3, %v797_v6  ;;  %v2064_v9 = vpop.f32.mrb[5].mxu1 }
 0xcc1   :  { %2363 = vtanh.f32 %v801_v8  ;;  %v1847_v12 = vmul.f32 -1.442695, %v801_v8 }
 0xcc3   :  { %2365 = vpow2.f32 %v1847_v12 }
 0xccb   :  { %v2364_v10 = vpop.eup %2363 }
 0xccc   :  { %815 = vrot.lane.b32.xlu0 %v2364_v10, %s2416_s12 }
 0xccd   :  { %v2366_v15 = vpop.eup %2365 }
 0xcce   :  { %v805_v16 = vadd.f32 1.0, %v2366_v15 }
 0xcd0   :  { %2367 = vrcp.f32 %v805_v16 }
 0xcda   :  { %v2368_v17 = vpop.eup %2367 }
 0xcdb   :  { %v813_v21 = vmul.f32 %v2368_v17, %v811_v20 }
 0xd3e   :  { %v816_v18 = vpop.permute.xlu0 %815 }
 0xd3f   :  { %v818_v19 = vmul.f32 %v2368_v17, %v816_v18  ;;  %v1854_v18 = vld [vmem:[%s2849_s1 + $0x28] sm:$0xff] }
 0xd41   :  { %820 = vrot.lane.b32.xlu0 %v818_v19, %s2417_s13 }
 0xd45   :  { %830 = vrot.lane.b32.xlu0 %v725_v2, %s2418_s14 }
 0xdb3   :  { %v821_v22 = vpop.permute.xlu0 %820 }
 0xdb4   :  { %v823_v23 = vadd.f32 %v821_v22, %v813_v21  ;;  %v1857_v22 = vld [vmem:[%s2850_s0 + $0x28] sm:$0xff] }
 0xdb6   :  { %2369 = vtanh.f32 %v823_v23  ;;  %v840_v24 = vsub.f32 %v823_v23, %v811_v20 }
 0xdb7   :  { %v831_v26 = vpop.permute.xlu0 %830 }
 0xdb8   :  { %842 = vrot.lane.b32.xlu0 %v840_v24, %s2418_s14 }
 0xdc0   :  { %v2370_v25 = vpop.eup %2369 }
 0xdc1   :  { %826 = vrot.lane.b32.xlu1 %v2370_v25, %s2416_s12 }
 0xe2a   :  { %v843_v28 = vpop.permute.xlu0 %842 }
 0xe2b   :  { %v845_v29 = vmul.f32 %v1843_v27, %v843_v28 }
 0xe2d   :  { %v846_v30 = vadd.f32 %v845_v29, %v645_v52 }
 0xe2f   :  { %1011 = vrot.lane.b32.xlu0 %v846_v30, %s2417_s13 }
 0xe33   :  { %v827_v31 = vpop.permute.xlu1 %826 }
 0xe34   :  { %v829_v32 = vmul.f32 %v2368_v17, %v827_v31 }
 0xe36   :  { %v833_v33 = vsub.f32 %v829_v32, %v831_v26 }
 0xe38   :  { %835 = vrot.lane.b32.xlu1 %v833_v33, %s2417_s13 }
 0xea1   :  { %v1012_v55 = vpop.permute.xlu0 %1011 }
 0xeaa   :  { %v836_v34 = vpop.permute.xlu1 %835 }
 0xeab   :  { %v838_v35 = vmul.f32 %v1843_v27, %v836_v34 }
 0xead   :  { %v839_v36 = vadd.f32 %v838_v35, %v725_v2 }
 0xeaf   :  { %2074 = vmatmul.mubr.msk.f32.vlgmr.msra.gmra.mrb[10].mxu0 %vm52_vm1, %v839_v36 }
 0xeb0   :  { %2261 = vmatpush3.bf16.msra.mxu0 %v2486_v5  ;;  %2095 = vmatprep.mubr.msk.f32.mxu0 %vm2414_vm0, %v2415_v4 }
 0xeb1   :  { %2262 = vmatprep.subr.bf16.mxu0 %v2413_v0 }
 0xeb4   :  { %2264 = vmatpush3.bf16.msra.mxu0 %v2495_v7 }
 0xeb5   :  { %2271 = vmatprep.subr.bf16.mxu0 %v2413_v0 }
 0xf82   :  { %v920_v37 = vpop.f32.mrb[10].mxu0 }
 0xf83   :  { %v921_v38 = vadd.f32 %v2530_v14, %v920_v37  ;;  %v2075_v39 = vpop.f32.mrb[11].mxu0 }
 0xf85   :  { %2371 = vtanh.f32 %v921_v38 }
 0xf8f   :  { %v2372_v41 = vpop.eup %2371 }
 0xf90   :  { %v925_v42 = vmul.f32 %v2372_v41, %v1848_v40  ;;  %v1855_v40 = vld [vmem:[%s2851_s2 + $0x28] sm:$0xff] }
 0xf92   :  { %v926_v43 = vadd.f32 %v925_v42, %v839_v36 }
 0xf94   :  { %2085 = vmatmul.mubr.msk.f32.vlgmr.msra.gmra.mrb[6].mxu1 %vm52_vm1, %v926_v43 }
 0xf95   :  { %2267 = vmatpush3.bf16.msra.mxu1 %v2512_v11  ;;  %2106 = vmatprep.mubr.msk.f32.mxu1 %vm2414_vm0, %v2415_v4 }
 0xf96   :  { %2268 = vmatprep.subr.bf16.mxu1 %v2413_v0 }
 0xf99   :  { %2270 = vmatpush3.bf16.msra.mxu1 %v2518_v13 }
 0xf9a   :  { %2277 = vmatprep.subr.bf16.mxu1 %v2413_v0 }
0x1067   :  { %v998_v45 = vpop.f32.mrb[6].mxu1 }
0x1068   :  { %v1002_v46 = vadd.f32 %v1851_v44, %v998_v45  ;;  %v2086_v47 = vpop.f32.mrb[7].mxu1 }
0x106a   :  { %2373 = vtanh.f32 %v1002_v46  ;;  %v1853_v49 = vmul.f32 -1.442695, %v1002_v46 }
0x106c   :  { %2375 = vpow2.f32 %v1853_v49 }
0x1074   :  { %v2374_v48 = vpop.eup %2373 }
0x1075   :  { %1016 = vrot.lane.b32.xlu1 %v2374_v48, %s2416_s12 }
0x1076   :  { %v2376_v50 = vpop.eup %2375 }
0x1077   :  { %v1006_v51 = vadd.f32 1.0, %v2376_v50 }
0x1079   :  { %2377 = vrcp.f32 %v1006_v51 }
0x1083   :  { %v2378_v52 = vpop.eup %2377 }
0x1084   :  { %v1014_v56 = vmul.f32 %v2378_v52, %v1012_v55 }
0x10e7   :  { %v1017_v53 = vpop.permute.xlu1 %1016 }
0x10e8   :  { %v1019_v54 = vmul.f32 %v2378_v52, %v1017_v53  ;;  %v1860_v53 = vld [vmem:[%s2849_s1 + $0x30] sm:$0xff] }
0x10ea   :  { %1021 = vrot.lane.b32.xlu1 %v1019_v54, %s2417_s13 }
0x10ee   :  { %1031 = vrot.lane.b32.xlu1 %v926_v43, %s2418_s14 }
0x115c   :  { %v1022_v57 = vpop.permute.xlu1 %1021 }
0x115d   :  { %v1024_v58 = vadd.f32 %v1022_v57, %v1014_v56 }
0x115f   :  { %2379 = vtanh.f32 %v1024_v58  ;;  %v1041_v59 = vsub.f32 %v1024_v58, %v1012_v55 }
0x1160   :  { %v1032_v61 = vpop.permute.xlu1 %1031 }
0x1161   :  { %1043 = vrot.lane.b32.xlu1 %v1041_v59, %s2418_s14 }
0x1169   :  { %v2380_v60 = vpop.eup %2379 }
0x116a   :  { %1027 = vrot.lane.b32.xlu0 %v2380_v60, %s2416_s12 }
0x11d3   :  { %v1044_v63 = vpop.permute.xlu1 %1043 }
0x11d4   :  { %v1046_v1 = vmul.f32 %v1849_v62, %v1044_v63 }
0x11d6   :  { %v1047_v2 = vadd.f32 %v1046_v1, %v846_v30 }
0x11d8   :  { %1212 = vrot.lane.b32.xlu1 %v1047_v2, %s2417_s13 }
0x11dc   :  { %v1028_v3 = vpop.permute.xlu0 %1027 }
0x11dd   :  { %v1030_v6 = vmul.f32 %v2378_v52, %v1028_v3 }
0x11df   :  { %v1034_v8 = vsub.f32 %v1030_v6, %v1032_v61 }
0x11e1   :  { %1036 = vrot.lane.b32.xlu0 %v1034_v8, %s2417_s13 }
0x124a   :  { %v1213_v33 = vpop.permute.xlu1 %1212 }
0x1253   :  { %v1037_v9 = vpop.permute.xlu0 %1036 }
0x1254   :  { %v1039_v10 = vmul.f32 %v1849_v62, %v1037_v9 }
0x1256   :  { %v1040_v12 = vadd.f32 %v1039_v10, %v926_v43 }
0x1258   :  { %2096 = vmatmul.mubr.msk.f32.vlgmr.msra.gmra.mrb[12].mxu0 %vm52_vm1, %v1040_v12 }
0x1259   :  { %2273 = vmatpush3.bf16.msra.mxu0 %v2486_v5  ;;  %2117 = vmatprep.mubr.msk.f32.mxu0 %vm2414_vm0, %v2415_v4 }
0x125a   :  { %2274 = vmatprep.subr.bf16.mxu0 %v2413_v0 }
0x125d   :  { %2276 = vmatpush3.bf16.msra.mxu0 %v2495_v7 }
0x125e   :  { %2283 = vmatprep.subr.bf16.mxu0 %v2413_v0 }
0x132b   :  { %v1121_v15 = vpop.f32.mrb[12].mxu0 }
0x132c   :  { %v1122_v16 = vadd.f32 %v2530_v14, %v1121_v15  ;;  %v2097_v17 = vpop.f32.mrb[13].mxu0 }
0x132e   :  { %2381 = vtanh.f32 %v1122_v16 }
0x1338   :  { %v2382_v19 = vpop.eup %2381 }
0x1339   :  { %v1126_v20 = vmul.f32 %v2382_v19, %v1854_v18 }
0x133b   :  { %v1127_v21 = vadd.f32 %v1126_v20, %v1040_v12  ;;  %v1861_v12 = vld [vmem:[%s2851_s2 + $0x30] sm:$0xff] }
0x133d   :  { %2107 = vmatmul.mubr.msk.f32.vlgmr.msra.gmra.mrb[8].mxu1 %vm52_vm1, %v1127_v21 }
0x133e   :  { %2279 = vmatpush3.bf16.msra.mxu1 %v2512_v11  ;;  %2128 = vmatprep.mubr.msk.f32.mxu1 %vm2414_vm0, %v2415_v4 }
0x133f   :  { %2280 = vmatprep.subr.bf16.mxu1 %v2413_v0 }
0x1342   :  { %2282 = vmatpush3.bf16.msra.mxu1 %v2518_v13 }
0x1343   :  { %2289 = vmatprep.subr.bf16.mxu1 %v2413_v0 }
0x1410   :  { %v1199_v23 = vpop.f32.mrb[8].mxu1 }
0x1411   :  { %v1203_v24 = vadd.f32 %v1857_v22, %v1199_v23  ;;  %v2108_v25 = vpop.f32.mrb[9].mxu1 }
0x1413   :  { %2383 = vtanh.f32 %v1203_v24  ;;  %v1859_v27 = vmul.f32 -1.442695, %v1203_v24 }
0x1415   :  { %2385 = vpow2.f32 %v1859_v27  ;;  %v1866_v27 = vld [vmem:[%s2849_s1 + $0x38] sm:$0xff] }
0x141d   :  { %v2384_v26 = vpop.eup %2383 }
0x141e   :  { %1217 = vrot.lane.b32.xlu0 %v2384_v26, %s2416_s12 }
0x141f   :  { %v2386_v28 = vpop.eup %2385 }
0x1420   :  { %v1207_v29 = vadd.f32 1.0, %v2386_v28 }
0x1422   :  { %2387 = vrcp.f32 %v1207_v29 }
0x142c   :  { %v2388_v30 = vpop.eup %2387 }
0x142d   :  { %v1215_v34 = vmul.f32 %v2388_v30, %v1213_v33 }
0x1490   :  { %v1218_v31 = vpop.permute.xlu0 %1217 }
0x1491   :  { %v1220_v32 = vmul.f32 %v2388_v30, %v1218_v31 }
0x1493   :  { %1222 = vrot.lane.b32.xlu0 %v1220_v32, %s2417_s13 }
0x1497   :  { %1232 = vrot.lane.b32.xlu0 %v1127_v21, %s2418_s14 }
0x1505   :  { %v1223_v35 = vpop.permute.xlu0 %1222 }
0x1506   :  { %v1225_v36 = vadd.f32 %v1223_v35, %v1215_v34 }
0x1508   :  { %2389 = vtanh.f32 %v1225_v36  ;;  %v1242_v37 = vsub.f32 %v1225_v36, %v1213_v33 }
0x1509   :  { %v1233_v39 = vpop.permute.xlu0 %1232 }
0x150a   :  { %1244 = vrot.lane.b32.xlu0 %v1242_v37, %s2418_s14 }
0x1512   :  { %v2390_v38 = vpop.eup %2389 }
0x1513   :  { %1228 = vrot.lane.b32.xlu1 %v2390_v38, %s2416_s12 }
0x157c   :  { %v1245_v41 = vpop.permute.xlu0 %1244 }
0x157d   :  { %v1247_v42 = vmul.f32 %v1855_v40, %v1245_v41 }
0x157f   :  { %v1248_v43 = vadd.f32 %v1247_v42, %v1047_v2 }
0x1581   :  { %1413 = vrot.lane.b32.xlu0 %v1248_v43, %s2417_s13 }
0x1585   :  { %v1229_v44 = vpop.permute.xlu1 %1228 }
0x1586   :  { %v1231_v45 = vmul.f32 %v2388_v30, %v1229_v44  ;;  %v1644_v44 = vld [vmem:[%s2852_s6] sm:$0xff] }
0x1588   :  { %v1235_v46 = vsub.f32 %v1231_v45, %v1233_v39  ;;  %v1645_v45 = vld [vmem:[%s2852_s6 + $0x8] sm:$0xff] }
0x158a   :  { %1237 = vrot.lane.b32.xlu1 %v1235_v46, %s2417_s13  ;;  %v2296_v46 = vpack.c.bf16 %v1645_v45, %v1644_v44 }
0x15f3   :  { %v1414_v1 = vpop.permute.xlu0 %1413 }
0x15fc   :  { %v1238_v47 = vpop.permute.xlu1 %1237 }
0x15fd   :  { %v1240_v48 = vmul.f32 %v1855_v40, %v1238_v47 }
0x15ff   :  { %v1241_v49 = vadd.f32 %v1240_v48, %v1127_v21  ;;  %v1646_v48 = vld [vmem:[%s2852_s6 + $0x10] sm:$0xff] }
0x1601   :  { %2118 = vmatmul.mubr.msk.f32.vlgmr.msra.gmra.mrb[14].mxu0 %vm52_vm1, %v1241_v49 }
0x1602   :  { %2285 = vmatpush3.bf16.msra.mxu0 %v2486_v5  ;;  %2139 = vmatprep.mubr.msk.f32.mxu0 %vm2414_vm0, %v2415_v4 }
0x1603   :  { %2286 = vmatprep.subr.bf16.mxu0 %v2413_v0 }
0x1606   :  { %2288 = vmatpush3.bf16.msra.mxu0 %v2495_v7  ;;  %v1863_v7 = vld [vmem:[%s2850_s0 + $0x30] sm:$0xff] }
0x1607   :  { %2295 = vmatprep.subr.bf16.mxu0 %v2413_v0 }
0x16d4   :  { %v1322_v50 = vpop.f32.mrb[14].mxu0 }
0x16d5   :  { %v1323_v51 = vadd.f32 %v2530_v14, %v1322_v50  ;;  %v2119_v52 = vpop.f32.mrb[15].mxu0 }
0x16d6   :  { %v1730_v52 = vld [vmem:[%s2853_s8 + $0x8] sm:$0xff] }
0x16d7   :  { %2391 = vtanh.f32 %v1323_v51  ;;  %v1729_v51 = vld [vmem:[%s2853_s8] sm:$0xff] }
0x16e1   :  { %v2392_v54 = vpop.eup %2391 }
0x16e2   :  { %v1327_v5 = vmul.f32 %v2392_v54, %v1860_v53  ;;  %v1731_v53 = vld [vmem:[%s2853_s8 + $0x10] sm:$0xff]  ;;  %v2302_v54 = vpack.c.bf16 %v1730_v52, %v1729_v51 }
0x16e4   :  { %v1328_v55 = vadd.f32 %v1327_v5, %v1241_v49  ;;  %v1647_v49 = vld [vmem:[%s2852_s6 + $0x18] sm:$0xff] }
0x16e5   :  { %v2299_v50 = vpack.c.bf16 %v1647_v49, %v1646_v48  ;;  %v1732_v5 = vld [vmem:[%s2853_s8 + $0x18] sm:$0xff] }
0x16e6   :  { %2129 = vmatmul.mubr.msk.f32.vlgmr.msra.gmra.mrb[10].mxu1 %vm52_vm1, %v1328_v55 }
0x16e7   :  { %2291 = vmatpush3.bf16.msra.mxu1 %v2512_v11  ;;  %2150 = vmatprep.mubr.msk.f32.mxu1 %vm2414_vm0, %v2415_v4 }
0x16e8   :  { %2292 = vmatprep.subr.bf16.mxu1 %v2413_v0 }
0x16eb   :  { %2294 = vmatpush3.bf16.msra.mxu1 %v2518_v13 }
0x16ec   :  { %2301 = vmatprep.subr.bf16.mxu1 %v2413_v0 }
0x17b9   :  { %v1400_v56 = vpop.f32.mrb[10].mxu1 }
0x17ba   :  { %v1404_v57 = vadd.f32 %v1863_v7, %v1400_v56  ;;  %v2130_v58 = vpop.f32.mrb[11].mxu1  ;;  %v2305_v7 = vpack.c.bf16 %v1732_v5, %v1731_v53 }
0x17bb   :  { %v1734_v58 = vld [vmem:[%s2853_s8 + $0x28] sm:$0xff] }
0x17bc   :  { %2393 = vtanh.f32 %v1404_v57  ;;  %v1865_v11 = vmul.f32 -1.442695, %v1404_v57  ;;  %v1733_v57 = vld [vmem:[%s2853_s8 + $0x20] sm:$0xff] }
0x17be   :  { %2395 = vpow2.f32 %v1865_v11 }
0x17c6   :  { %v2394_v59 = vpop.eup %2393 }
0x17c7   :  { %1418 = vrot.lane.b32.xlu1 %v2394_v59, %s2416_s12 }
0x17c8   :  { %v2396_v60 = vpop.eup %2395 }
0x17c9   :  { %v1408_v61 = vadd.f32 1.0, %v2396_v60  ;;  %v2308_v60 = vpack.c.bf16 %v1734_v58, %v1733_v57 }
0x17cb   :  { %2397 = vrcp.f32 %v1408_v61  ;;  %v1735_v61 = vld [vmem:[%s2853_s8 + $0x30] sm:$0xff] }
0x17d5   :  { %v2398_v62 = vpop.eup %2397 }
0x17d6   :  { %v1416_v2 = vmul.f32 %v2398_v62, %v1414_v1 }
0x1839   :  { %v1419_v13 = vpop.permute.xlu1 %1418 }
0x183a   :  { %v1421_v63 = vmul.f32 %v2398_v62, %v1419_v13 }
0x183c   :  { %1423 = vrot.lane.b32.xlu1 %v1421_v63, %s2417_s13  ;;  %v1737_v63 = vld [vmem:[%s2853_s8 + $0x40] sm:$0xff] }
0x1840   :  { %1433 = vrot.lane.b32.xlu1 %v1328_v55, %s2418_s14 }
0x18ae   :  { %v1424_v3 = vpop.permute.xlu1 %1423 }
0x18af   :  { %v1426_v6 = vadd.f32 %v1424_v3, %v1416_v2  ;;  %v1867_v3 = vld [vmem:[%s2851_s2 + $0x38] sm:$0xff] }
0x18b1   :  { %2399 = vtanh.f32 %v1426_v6  ;;  %v1443_v8 = vsub.f32 %v1426_v6, %v1414_v1  ;;  %v1738_v1 = vld [vmem:[%s2853_s8 + $0x48] sm:$0xff] }
0x18b2   :  { %v1434_v10 = vpop.permute.xlu1 %1433  ;;  %v2314_v2 = vpack.c.bf16 %v1738_v1, %v1737_v63 }
0x18b3   :  { %1445 = vrot.lane.b32.xlu1 %v1443_v8, %s2418_s14 }
0x18bb   :  { %v2400_v9 = vpop.eup %2399 }
0x18bc   :  { %1429 = vrot.lane.b32.xlu0 %v2400_v9, %s2416_s12 }
0x1925   :  { %v1446_v15 = vpop.permute.xlu1 %1445 }
0x1926   :  { %v1448_v16 = vmul.f32 %v1861_v12, %v1446_v15 }
0x1928   :  { %v1449_v17 = vadd.f32 %v1448_v16, %v1248_v43  ;;  %v1741_v16 = vld [vmem:[%s2853_s8 + $0x60] sm:$0xff] }
0x192a   :  { %1614 = vrot.lane.b32.xlu1 %v1449_v17, %s2417_s13  ;;  %v1742_v17 = vld [vmem:[%s2853_s8 + $0x68] sm:$0xff] }
0x192e   :  { %v1430_v18 = vpop.permute.xlu0 %1429 }
0x192f   :  { %v1432_v19 = vmul.f32 %v2398_v62, %v1430_v18  ;;  %v1736_v62 = vld [vmem:[%s2853_s8 + $0x38] sm:$0xff]  ;;  %v2320_v18 = vpack.c.bf16 %v1742_v17, %v1741_v16 }
0x1930   :  { %v2311_v13 = vpack.c.bf16 %v1736_v62, %v1735_v61 }
0x1931   :  { %v1436_v20 = vsub.f32 %v1432_v19, %v1434_v10  ;;  %v1739_v10 = vld [vmem:[%s2853_s8 + $0x50] sm:$0xff] }
0x1932   :  { %v1743_v19 = vld [vmem:[%s2853_s8 + $0x70] sm:$0xff] }
0x1933   :  { %1438 = vrot.lane.b32.xlu0 %v1436_v20, %s2417_s13  ;;  %v1744_v20 = vld [vmem:[%s2853_s8 + $0x78] sm:$0xff] }
0x19a5   :  { %v1439_v21 = vpop.permute.xlu0 %1438 }
0x19a6   :  { %v1441_v22 = vmul.f32 %v1861_v12, %v1439_v21  ;;  %v1740_v12 = vld [vmem:[%s2853_s8 + $0x58] sm:$0xff]  ;;  %v2323_v21 = vpack.c.bf16 %v1744_v20, %v1743_v19 }
0x19a7   :  { %v2317_v15 = vpack.c.bf16 %v1740_v12, %v1739_v10 }
0x19a8   :  { %v1442_v23 = vadd.f32 %v1441_v22, %v1328_v55  ;;  %v1872_v22 = vld [vmem:[%s2854_s7] ss:$0 sm:$0xff] }
0x19aa   :  { %2140 = vmatmul.mubr.msk.f32.vlgmr.msra.gmra.mrb[16].mxu0 %vm52_vm1, %v1442_v23 }
0x19ab   :  { %2161 = vmatprep.mubr.msk.f32.mxu0 %vm2414_vm0, %v2415_v4  ;;  %2297 = vmatpush3.bf16.msra.mxu0 %v2296_v46 }
0x19ac   :  { %2298 = vmatprep.subr.bf16.mxu0 %v2413_v0 }
0x19af   :  { %2300 = vmatpush3.bf16.msra.mxu0 %v2299_v50 }
0x1a7d   :  { %v1523_v24 = vpop.f32.mrb[16].mxu0 }
0x1a7e   :  { %v1524_v25 = vadd.f32 %v2530_v14, %v1523_v24  ;;  %v2141_v26 = vpop.f32.mrb[17].mxu0  ;;  %v1869_v14 = vld [vmem:[%s2850_s0 + $0x38] sm:$0xff] }
0x1a80   :  { %2401 = vtanh.f32 %v1524_v25 }
0x1a8a   :  { %v2402_v28 = vpop.eup %2401 }
0x1a8b   :  { %v1528_v29 = vmul.f32 %v2402_v28, %v1866_v27  ;;  %v1874_v27 = vld [vmem:[%s2855_s9] ss:$0 sm:$0xff] }
0x1a8d   :  { %v2749_v30 = vadd.f32 %v1528_v29, %v1442_v23 }
0x1a8f   :  { %2151 = vmatmul.mubr.msk.f32.vlgmr.msra.gmra.mrb[12].mxu1 %vm52_vm1, %v2749_v30 }
0x1a90   :  { %2196 = vmatprep.mubr.msk.f32.mxu1 %vm2414_vm0, %v2415_v4  ;;  %v1615_v4 = vpop.permute.xlu1 %1614  ;;  %2303 = vmatpush3.bf16.msra.mxu1 %v2302_v54 }
0x1a91   :  { %2304 = vmatprep.subr.bf16.mxu1 %v2413_v0 }
0x1a94   :  { %2306 = vmatpush3.bf16.msra.mxu1 %v2305_v7 }
0x1a95   :  { %2307 = vmatprep.subr.bf16.mxu1 %v2413_v0 }
0x1a98   :  { %2309 = vmatpush3.bf16.msra.mxu1 %v2308_v60 }
0x1a99   :  { %2310 = vmatprep.subr.bf16.mxu1 %v2413_v0 }
0x1a9c   :  { %2312 = vmatpush3.bf16.msra.mxu1 %v2311_v13 }
0x1a9d   :  { %2313 = vmatprep.subr.bf16.mxu1 %v2413_v0 }
0x1aa0   :  { %2315 = vmatpush3.bf16.msra.mxu1 %v2314_v2 }
0x1aa1   :  { %2316 = vmatprep.subr.bf16.mxu1 %v2413_v0 }
0x1aa4   :  { %2318 = vmatpush3.bf16.msra.mxu1 %v2317_v15 }
0x1aa5   :  { %2319 = vmatprep.subr.bf16.mxu1 %v2413_v0 }
0x1aa8   :  { %2321 = vmatpush3.bf16.msra.mxu1 %v2320_v18 }
0x1aa9   :  { %2322 = vmatprep.subr.bf16.mxu1 %v2413_v0 }
0x1aac   :  { %2324 = vmatpush3.bf16.msra.mxu1 %v2323_v21 }
0x1b62   :  { %v1601_v31 = vpop.f32.mrb[12].mxu1 }
0x1b63   :  { %v1605_v32 = vadd.f32 %v1869_v14, %v1601_v31  ;;  %v2152_v33 = vpop.f32.mrb[13].mxu1 }
0x1b65   :  { %2403 = vtanh.f32 %v1605_v32  ;;  %v1871_v35 = vmul.f32 -1.442695, %v1605_v32 }
0x1b67   :  { %2405 = vpow2.f32 %v1871_v35 }
0x1b6f   :  { %v2404_v34 = vpop.eup %2403 }
0x1b70   :  { %1619 = vrot.lane.b32.xlu0 %v2404_v34, %s2416_s12 }
0x1b71   :  { %v2406_v36 = vpop.eup %2405 }
0x1b72   :  { %v1609_v37 = vadd.f32 1.0, %v2406_v36 }
0x1b74   :  { %2407 = vrcp.f32 %v1609_v37 }
0x1b7e   :  { %v2408_v38 = vpop.eup %2407 }
0x1b7f   :  { %v1617_v41 = vmul.f32 %v2408_v38, %v1615_v4 }
0x1be2   :  { %v1620_v39 = vpop.permute.xlu0 %1619 }
0x1be3   :  { %v1622_v40 = vmul.f32 %v2408_v38, %v1620_v39 }
0x1be5   :  { %1624 = vrot.lane.b32.xlu0 %v1622_v40, %s2417_s13 }
0x1be9   :  { %1634 = vrot.lane.b32.xlu0 %v2749_v30, %s2418_s14 }
0x1c57   :  { %v1625_v42 = vpop.permute.xlu0 %1624 }
0x1c58   :  { %v1627_v43 = vadd.f32 %v1625_v42, %v1617_v41 }
0x1c5a   :  { %2409 = vtanh.f32 %v1627_v43 }
0x1c5b   :  { %v1635_v59 = vpop.permute.xlu0 %1634 }
0x1c64   :  { %v2410_v47 = vpop.eup %2409 }
0x1c65   :  { %1630 = vrot.lane.b32.xlu1 %v2410_v47, %s2416_s12 }
0x1cd7   :  { %v1631_v55 = vpop.permute.xlu1 %1630 }
0x1cd8   :  { %v1633_v56 = vmul.f32 %v2408_v38, %v1631_v55 }
0x1cda   :  { %v1637_v11 = vsub.f32 %v1633_v56, %v1635_v59 }
0x1cdc   :  { %1639 = vrot.lane.b32.xlu1 %v1637_v11, %s2417_s13 }
0x1d4e   :  { %v1640_v6 = vpop.permute.xlu1 %1639 }
0x1d4f   :  { %v1642_v8 = vmul.f32 %v1867_v3, %v1640_v6 }
0x1d51   :  { %v1643_v9 = vadd.f32 %v1642_v8, %v2749_v30 }
0x1d53   :  { %2162 = vmatmul.mubr.msk.f32.vlgmr.msra.gmra.mrb[18].mxu0 %vm52_vm1, %v1643_v9 }
0x1e26   :  { %v1724_v23 = vpop.f32.mrb[18].mxu0 }
0x1e27   :  { %v1725_v24 = vadd.f32 %v1872_v22, %v1724_v23  ;;  %v2163_v25 = vpop.f32.mrb[19].mxu0 }
0x1e29   :  { %2411 = vtanh.f32 %v1725_v24 }
0x1e33   :  { %v2412_v26 = vpop.eup %2411 }
0x1e34   :  { %2197 = vmatmul.mubr.f32.vlgmr.msra.gmra.mrb[14].mxu1 %v2412_v26 }
0x1f07   :  { %v1818_v28 = vpop.f32.mrb[14].mxu1 }
0x1f08   :  { %v1819_v29 = vadd.f32 %v1874_v27, %v1818_v28  ;;  %v2198_v30 = vpop.f32.mrb[15].mxu1 }
0x1f0a   :  { %1822 = vst [vmem:[%s2856_s10] sm:$0xff] %v1819_v29 }

</bundles_post_ra>
